<compile_context>
chip_gen: v7x
topology: tpu7x:2x2x1
jax: 0.10.0
libtpu: 0.0.40
codegen_flags: <defaults>
</compile_context>

<pallas_src>
import functools
import math

import jax
import jax.numpy as jnp
from jax import lax
from jax.experimental import pallas as pl
from jax.experimental.pallas import tpu as pltpu


_MASK_VALUE = -1e30                 # finite "-inf" for masked logits
_VMEM_LIMIT = 48 * 1024 * 1024      # headroom under v7x's 64 MiB VMEM


def _pick_tile(s: int) -> int:
    """Largest power-of-two tile (<=256) that divides the sequence length."""
    for t in (256, 128, 64, 32, 16, 8):
        if s % t == 0:
            return t
    return s


# ---------------------------------------------------------------------------
# Kernel 1: per-head QKV projection -> head-major (bs, H, S, d_head).
# ---------------------------------------------------------------------------
def _qkv_proj_kernel(x_ref, wq_ref, wk_ref, wv_ref, bq_ref, bk_ref, bv_ref,
                     q_ref, k_ref, v_ref, *, n_heads):
    x = x_ref[0]                                        # (ts, D), native dtype
    for h in range(n_heads):                            # static & small
        q_ref[0, h] = (jnp.dot(x, wq_ref[h], preferred_element_type=jnp.float32)
                       + bq_ref[h]).astype(q_ref.dtype)
        k_ref[0, h] = (jnp.dot(x, wk_ref[h], preferred_element_type=jnp.float32)
                       + bk_ref[h]).astype(k_ref.dtype)
        v_ref[0, h] = (jnp.dot(x, wv_ref[h], preferred_element_type=jnp.float32)
                       + bv_ref[h]).astype(v_ref.dtype)


# ---------------------------------------------------------------------------
# Kernel 2: flash attention, online softmax over KV tiles.
# grid = (bs, H, n_q_tiles, n_kv_tiles); kv axis is the reduction.
# ---------------------------------------------------------------------------
def _flash_attn_kernel(q_ref, k_ref, v_ref, o_ref, m_sc, l_sc, acc_sc,
                       *, tq, tk, causal):
    qi = pl.program_id(2)
    ki = pl.program_id(3)

    @pl.when(ki == 0)
    def _init():
        m_sc[...] = jnp.full_like(m_sc, -jnp.inf)
        l_sc[...] = jnp.zeros_like(l_sc)
        acc_sc[...] = jnp.zeros_like(acc_sc)

    def _update():
        q = q_ref[0, 0]                                 # (tq, dh), pre-scaled
        k = k_ref[0, 0]                                 # (tk, dh)
        # Q @ K^T without materializing a transpose: contract the last dims.
        s = lax.dot_general(q, k, (((1,), (1,)), ((), ())),
                            preferred_element_type=jnp.float32)   # (tq, tk)
        if causal:
            row = qi * tq + lax.broadcasted_iota(jnp.int32, (tq, tk), 0)
            col = ki * tk + lax.broadcasted_iota(jnp.int32, (tq, tk), 1)
            s = jnp.where(col > row, _MASK_VALUE, s)

        m_prev = m_sc[...]
        m_new = jnp.maximum(m_prev, jnp.max(s, axis=-1, keepdims=True))
        alpha = jnp.exp(m_prev - m_new)
        p = jnp.exp(s - m_new)                          # unnormalized probs
        l_sc[...] = alpha * l_sc[...] + jnp.sum(p, axis=-1, keepdims=True)
        acc_sc[...] = alpha * acc_sc[...] + jnp.dot(
            p.astype(v_ref.dtype), v_ref[0, 0],
            preferred_element_type=jnp.float32)
        m_sc[...] = m_new

    if causal:
        # Skip KV tiles that lie entirely above the causal diagonal.
        @pl.when(ki * tk <= qi * tq + (tq - 1))
        def _():
            _update()
    else:
        _update()

    @pl.when(ki == pl.num_programs(3) - 1)
    def _finalize():
        # Deferred normalization: a single (tq, d_head) scale via EUP recip.
        inv_l = pl.reciprocal(l_sc[...], approx=True)
        o_ref[0, 0] = (acc_sc[...] * inv_l).astype(o_ref.dtype)


# ---------------------------------------------------------------------------
# Kernel 3: output projection (contract heads) -> lane-dense (tile, D) output.
# ---------------------------------------------------------------------------
def _out_proj_kernel(ctx_ref, wout_ref, bout_ref, o_ref, *, n_heads):
    acc = jnp.dot(ctx_ref[0, 0], wout_ref[0], preferred_element_type=jnp.float32)
    for h in range(1, n_heads):
        acc = acc + jnp.dot(ctx_ref[0, h], wout_ref[h],
                            preferred_element_type=jnp.float32)
    o_ref[0] = (acc + bout_ref[...]).astype(o_ref.dtype)


# ---------------------------------------------------------------------------
# Wrapper
# ---------------------------------------------------------------------------
def self_attention(x, w_in, b_in, w_out, b_out, *, n_heads, causal_mask=False):
    """x: (bs, S, D).  w_in: (D, 3D) (= in_proj.weight.T), b_in: (3D,),
    w_out: (D, D) (= out_proj.weight.T), b_out: (D,)."""
    bs, S, D = x.shape
    assert D % n_heads == 0
    H = n_heads
    dh = D // H
    dtype = x.dtype                      # matmul operand dtype (bf16 for prod)
    f32 = jnp.float32

    # ---- host-side one-time parameter layout (outside the hot kernels) -----
    w_in = w_in.astype(f32)
    b_in = b_in.astype(f32)
    scale = 1.0 / math.sqrt(dh)
    wq, wk, wv = w_in[:, :D] * scale, w_in[:, D:2 * D], w_in[:, 2 * D:]
    bq, bk, bv = b_in[:D] * scale, b_in[D:2 * D], b_in[2 * D:]

    def head_major(w):                   # (D, D) -> (H, D, dh)
        return jnp.transpose(w.reshape(D, H, dh), (1, 0, 2)).astype(dtype)

    wq_h, wk_h, wv_h = head_major(wq), head_major(wk), head_major(wv)
    bq_h = bq.reshape(H, 1, dh).astype(dtype)
    bk_h = bk.reshape(H, 1, dh).astype(dtype)
    bv_h = bv.reshape(H, 1, dh).astype(dtype)
    wout_h = w_out.astype(f32).reshape(H, dh, D).astype(dtype)
    bout = b_out.astype(f32).reshape(1, D).astype(dtype)

    t = _pick_tile(S)
    n_t = S // t
    const3 = lambda b, s: (0, 0, 0)

    # 1) QKV projection -> (bs, H, S, dh) each; Q already scaled by 1/sqrt(dh).
    q, k, v = pl.pallas_call(
        functools.partial(_qkv_proj_kernel, n_heads=H),
        out_shape=[jax.ShapeDtypeStruct((bs, H, S, dh), dtype)] * 3,
        grid=(bs, n_t),
        in_specs=[
            pl.BlockSpec((1, t, D), lambda b, s: (b, s, 0)),
            pl.BlockSpec((H, D, dh), const3),
            pl.BlockSpec((H, D, dh), const3),
            pl.BlockSpec((H, D, dh), const3),
            pl.BlockSpec((H, 1, dh), const3),
            pl.BlockSpec((H, 1, dh), const3),
            pl.BlockSpec((H, 1, dh), const3),
        ],
        out_specs=[pl.BlockSpec((1, H, t, dh), lambda b, s: (b, 0, s, 0))] * 3,
        compiler_params=pltpu.CompilerParams(
            dimension_semantics=("parallel", "parallel"),
            vmem_limit_bytes=_VMEM_LIMIT),
    )(x, wq_h, wk_h, wv_h, bq_h, bk_h, bv_h)

    # 2) Flash attention over (batch, head, q-tile) with a KV-tile reduction.
    ctx = pl.pallas_call(
        functools.partial(_flash_attn_kernel, tq=t, tk=t, causal=causal_mask),
        out_shape=jax.ShapeDtypeStruct((bs, H, S, dh), dtype),
        grid=(bs, H, n_t, n_t),
        in_specs=[
            pl.BlockSpec((1, 1, t, dh), lambda b, h, i, j: (b, h, i, 0)),
            pl.BlockSpec((1, 1, t, dh), lambda b, h, i, j: (b, h, j, 0)),
            pl.BlockSpec((1, 1, t, dh), lambda b, h, i, j: (b, h, j, 0)),
        ],
        out_specs=pl.BlockSpec((1, 1, t, dh), lambda b, h, i, j: (b, h, i, 0)),
        scratch_shapes=[pltpu.VMEM((t, 1), jnp.float32),
                        pltpu.VMEM((t, 1), jnp.float32),
                        pltpu.VMEM((t, dh), jnp.float32)],
        compiler_params=pltpu.CompilerParams(
            dimension_semantics=("parallel", "parallel", "parallel", "arbitrary"),
            vmem_limit_bytes=_VMEM_LIMIT),
    )(q, k, v)

    # 3) Output projection (contract the head axis), lane-dense output.
    out = pl.pallas_call(
        functools.partial(_out_proj_kernel, n_heads=H),
        out_shape=jax.ShapeDtypeStruct((bs, S, D), dtype),
        grid=(bs, n_t),
        in_specs=[
            pl.BlockSpec((1, H, t, dh), lambda b, s: (b, 0, s, 0)),
            pl.BlockSpec((H, dh, D), const3),
            pl.BlockSpec((1, D), lambda b, s: (0, 0)),
        ],
        out_specs=pl.BlockSpec((1, t, D), lambda b, s: (b, s, 0)),
        compiler_params=pltpu.CompilerParams(
            dimension_semantics=("parallel", "parallel"),
            vmem_limit_bytes=_VMEM_LIMIT),
    )(ctx, wout_h, bout)
    return out


# ---------------------------------------------------------------------------
# Pure-JAX reference mirroring the PyTorch forward exactly.
# ---------------------------------------------------------------------------
def _reference(x, w_in, b_in, w_out, b_out, *, n_heads, causal_mask=False):
    bs, S, D = x.shape
    dh = D // n_heads
    x = x.astype(jnp.float32)
    qkv = x @ w_in + b_in
    q, k, v = jnp.split(qkv, 3, axis=-1)

    def heads(t):
        return t.reshape(bs, S, n_heads, dh).transpose(0, 2, 1, 3)

    q, k, v = heads(q), heads(k), heads(v)
    w = jnp.einsum('bhqd,bhkd->bhqk', q, k)
    if causal_mask:
        mask = jnp.triu(jnp.ones((S, S), dtype=bool), k=1)
        w = jnp.where(mask, -jnp.inf, w)
    w = w / math.sqrt(dh)
    w = jax.nn.softmax(w, axis=-1)
    out = jnp.einsum('bhqk,bhkd->bhqd', w, v)
    out = out.transpose(0, 2, 1, 3).reshape(bs, S, D)
    return out @ w_out + b_out


if __name__ == "__main__":
    # Small shapes consistent with the module: bs=2, seq=8, d_embed=32, heads=4.
    bs, seq_len, d_embed, n_heads = 2, 8, 32, 4

    key = jax.random.PRNGKey(0)
    kx, k1, k2, k3, k4 = jax.random.split(key, 5)

    x = jax.random.normal(kx, (bs, seq_len, d_embed), dtype=jnp.float32)

    bound = 1.0 / math.sqrt(d_embed)
    w_in = jax.random.uniform(k1, (d_embed, 3 * d_embed), jnp.float32, -bound, bound)
    b_in = jax.random.uniform(k2, (3 * d_embed,), jnp.float32, -bound, bound)
    w_out = jax.random.uniform(k3, (d_embed, d_embed), jnp.float32, -bound, bound)
    b_out = jax.random.uniform(k4, (d_embed,), jnp.float32, -bound, bound)

    run = jax.jit(functools.partial(self_attention, n_heads=n_heads,
                                    causal_mask=False))
    run_causal = jax.jit(functools.partial(self_attention, n_heads=n_heads,
                                           causal_mask=True))

    # f32 operand path.
    out = jax.block_until_ready(run(x, w_in, b_in, w_out, b_out))
    ref = _reference(x, w_in, b_in, w_out, b_out, n_heads=n_heads,
                     causal_mask=False)
    assert out.shape == (bs, seq_len, d_embed)
    assert jnp.allclose(out, ref, atol=5e-3, rtol=5e-3), \
        float(jnp.max(jnp.abs(out - ref)))

    # Causal-mask path.
    out_c = jax.block_until_ready(run_causal(x, w_in, b_in, w_out, b_out))
    ref_c = _reference(x, w_in, b_in, w_out, b_out, n_heads=n_heads,
                       causal_mask=True)
    assert jnp.allclose(out_c, ref_c, atol=5e-3, rtol=5e-3), \
        float(jnp.max(jnp.abs(out_c - ref_c)))

    # bf16 operand path (MXU-friendly; f32 accumulation inside the kernels).
    out_bf16 = jax.block_until_ready(
        run(x.astype(jnp.bfloat16), w_in, b_in, w_out, b_out))
    assert jnp.allclose(out_bf16.astype(jnp.float32), ref,
                        atol=5e-2, rtol=5e-2), \
        float(jnp.max(jnp.abs(out_bf16.astype(jnp.float32) - ref)))

    print("KERNEL_OK")
</pallas_src>

<mosaic_0001>
module attributes {stable_mosaic.version = 11 : i64} {
  func.func @_flash_attn_kernel(%arg0: i32, %arg1: i32, %arg2: i32, %arg3: i32, %arg4: memref<1x1x8x8xf32, #tpu.memory_space<vmem>>, %arg5: memref<1x1x8x8xf32, #tpu.memory_space<vmem>>, %arg6: memref<1x1x8x8xf32, #tpu.memory_space<vmem>>, %arg7: memref<1x1x8x8xf32, #tpu.memory_space<vmem>>, %arg8: memref<8x1xf32, #tpu.memory_space<vmem>>, %arg9: memref<8x1xf32, #tpu.memory_space<vmem>>, %arg10: memref<8x8xf32, #tpu.memory_space<vmem>>) attributes {dimension_semantics = [#tpu.dimension_semantics<parallel>, #tpu.dimension_semantics<parallel>, #tpu.dimension_semantics<parallel>, #tpu.dimension_semantics<arbitrary>], iteration_bounds = array<i64: 2, 4, 1, 1>, scalar_prefetch = 0 : i64, scratch_operands = 3 : i64, tpu.core_type = #tpu.core_type<tc>, window_params = [{transform_indices = @transform_0, window_bounds = array<i64: 1, 1, 8, 8>}, {transform_indices = @transform_1, window_bounds = array<i64: 1, 1, 8, 8>}, {transform_indices = @transform_2, window_bounds = array<i64: 1, 1, 8, 8>}, {transform_indices = @transform_3, window_bounds = array<i64: 1, 1, 8, 8>}]} {
    %c0_i32 = arith.constant 0 : i32
    %0 = arith.cmpi eq, %arg3, %c0_i32 : i32
    %1 = arith.extui %0 : i1 to i32
    %c0_i32_0 = arith.constant 0 : i32
    %2 = arith.cmpi ne, %1, %c0_i32_0 : i32
    scf.if %2 {
      %cst_29 = arith.constant 0xFF800000 : f32
      %35 = vector.broadcast %cst_29 : f32 to vector<8x1xf32>
      %c0_30 = arith.constant 0 : index
      %c0_31 = arith.constant 0 : index
      %36 = vector.load %arg8[%c0_30, %c0_31] : memref<8x1xf32, #tpu.memory_space<vmem>>, vector<8x1xf32>
      tpu.vector_store %arg8[%c0_30, %c0_31], %35 {strides = array<i32>} : memref<8x1xf32, #tpu.memory_space<vmem>>, vector<8x1xf32>,
      %cst_32 = arith.constant 0.000000e+00 : f32
      %37 = vector.broadcast %cst_32 : f32 to vector<8x1xf32>
      %c0_33 = arith.constant 0 : index
      %c0_34 = arith.constant 0 : index
      %38 = vector.load %arg9[%c0_33, %c0_34] : memref<8x1xf32, #tpu.memory_space<vmem>>, vector<8x1xf32>
      tpu.vector_store %arg9[%c0_33, %c0_34], %37 {strides = array<i32>} : memref<8x1xf32, #tpu.memory_space<vmem>>, vector<8x1xf32>,
      %cst_35 = arith.constant 0.000000e+00 : f32
      %39 = vector.broadcast %cst_35 : f32 to vector<8x8xf32>
      %c0_36 = arith.constant 0 : index
      %c0_37 = arith.constant 0 : index
      %40 = vector.load %arg10[%c0_36, %c0_37] : memref<8x8xf32, #tpu.memory_space<vmem>>, vector<8x8xf32>
      tpu.vector_store %arg10[%c0_36, %c0_37], %39 {strides = array<i32>} : memref<8x8xf32, #tpu.memory_space<vmem>>, vector<8x8xf32>,
    } else {
    }
    %c0 = arith.constant 0 : index
    %c0_1 = arith.constant 0 : index
    %c0_2 = arith.constant 0 : index
    %c0_3 = arith.constant 0 : index
    %3 = vector.load %arg4[%c0, %c0_1, %c0_2, %c0_3] : memref<1x1x8x8xf32, #tpu.memory_space<vmem>>, vector<1x1x8x8xf32>
    %4 = vector.shape_cast %3 : vector<1x1x8x8xf32> to vector<8x8xf32>
    %c0_4 = arith.constant 0 : index
    %c0_5 = arith.constant 0 : index
    %c0_6 = arith.constant 0 : index
    %c0_7 = arith.constant 0 : index
    %5 = vector.load %arg5[%c0_4, %c0_5, %c0_6, %c0_7] : memref<1x1x8x8xf32, #tpu.memory_space<vmem>>, vector<1x1x8x8xf32>
    %6 = vector.shape_cast %5 : vector<1x1x8x8xf32> to vector<8x8xf32>
    %cst = arith.constant dense<0.000000e+00> : vector<8x8xf32>
    %7 = tpu.matmul %4, %6, %cst {dimension_numbers = #tpu.dot_dimension_numbers<[1], [1], [0], [0], [0, 0, 1, 0], [], []>} : vector<8x8xf32>, vector<8x8xf32>, vector<8x8xf32> -> vector<8x8xf32>
    %c0_8 = arith.constant 0 : index
    %c0_9 = arith.constant 0 : index
    %8 = vector.load %arg8[%c0_8, %c0_9] : memref<8x1xf32, #tpu.memory_space<vmem>>, vector<8x1xf32>
    %cst_10 = arith.constant dense<0xFF800000> : vector<8xf32>
    %9 = vector.multi_reduction <maximumf>, %7, %cst_10 [1] : vector<8x8xf32> to vector<8xf32>
    %10 = vector.shape_cast %9 : vector<8xf32> to vector<8x1xf32>
    %11 = arith.maximumf %8, %10 : vector<8x1xf32>
    %12 = arith.subf %8, %11 : vector<8x1xf32>
    %13 = math.exp %12 : vector<8x1xf32>
    %14 = vector.broadcast %11 : vector<8x1xf32> to vector<8x8xf32>
    %15 = arith.subf %7, %14 : vector<8x8xf32>
    %16 = math.exp %15 : vector<8x8xf32>
    %c0_11 = arith.constant 0 : index
    %c0_12 = arith.constant 0 : index
    %17 = vector.load %arg9[%c0_11, %c0_12] : memref<8x1xf32, #tpu.memory_space<vmem>>, vector<8x1xf32>
    %18 = arith.mulf %13, %17 : vector<8x1xf32>
    %cst_13 = arith.constant dense<0.000000e+00> : vector<8xf32>
    %19 = vector.multi_reduction <add>, %16, %cst_13 [1] : vector<8x8xf32> to vector<8xf32>
    %20 = vector.shape_cast %19 : vector<8xf32> to vector<8x1xf32>
    %21 = arith.addf %18, %20 : vector<8x1xf32>
    %c0_14 = arith.constant 0 : index
    %c0_15 = arith.constant 0 : index
    %22 = vector.load %arg9[%c0_14, %c0_15] : memref<8x1xf32, #tpu.memory_space<vmem>>, vector<8x1xf32>
    tpu.vector_store %arg9[%c0_14, %c0_15], %21 {strides = array<i32>} : memref<8x1xf32, #tpu.memory_space<vmem>>, vector<8x1xf32>,
    %c0_16 = arith.constant 0 : index
    %c0_17 = arith.constant 0 : index
    %23 = vector.load %arg10[%c0_16, %c0_17] : memref<8x8xf32, #tpu.memory_space<vmem>>, vector<8x8xf32>
    %24 = vector.broadcast %13 : vector<8x1xf32> to vector<8x8xf32>
    %25 = arith.mulf %24, %23 : vector<8x8xf32>
    %c0_18 = arith.constant 0 : index
    %c0_19 = arith.constant 0 : index
    %c0_20 = arith.constant 0 : index
    %c0_21 = arith.constant 0 : index
    %26 = vector.load %arg6[%c0_18, %c0_19, %c0_20, %c0_21] : memref<1x1x8x8xf32, #tpu.memory_space<vmem>>, vector<1x1x8x8xf32>
    %27 = vector.shape_cast %26 : vector<1x1x8x8xf32> to vector<8x8xf32>
    %cst_22 = arith.constant dense<0.000000e+00> : vector<8x8xf32>
    %28 = tpu.matmul %16, %27, %cst_22 {dimension_numbers = #tpu.dot_dimension_numbers<[1], [0], [0], [1], [0, 0, 1, 1], [], []>} : vector<8x8xf32>, vector<8x8xf32>, vector<8x8xf32> -> vector<8x8xf32>
    %29 = arith.addf %25, %28 : vector<8x8xf32>
    %c0_23 = arith.constant 0 : index
    %c0_24 = arith.constant 0 : index
    %30 = vector.load %arg10[%c0_23, %c0_24] : memref<8x8xf32, #tpu.memory_space<vmem>>, vector<8x8xf32>
    tpu.vector_store %arg10[%c0_23, %c0_24], %29 {strides = array<i32>} : memref<8x8xf32, #tpu.memory_space<vmem>>, vector<8x8xf32>,
    %c0_25 = arith.constant 0 : index
    %c0_26 = arith.constant 0 : index
    %31 = vector.load %arg8[%c0_25, %c0_26] : memref<8x1xf32, #tpu.memory_space<vmem>>, vector<8x1xf32>
    tpu.vector_store %arg8[%c0_25, %c0_26], %11 {strides = array<i32>} : memref<8x1xf32, #tpu.memory_space<vmem>>, vector<8x1xf32>,
    %c0_i32_27 = arith.constant 0 : i32
    %32 = arith.cmpi eq, %arg3, %c0_i32_27 : i32
    %33 = arith.extui %32 : i1 to i32
    %c0_i32_28 = arith.constant 0 : i32
    %34 = arith.cmpi ne, %33, %c0_i32_28 : i32
    scf.if %34 {
      %c0_29 = arith.constant 0 : index
      %c0_30 = arith.constant 0 : index
      %35 = vector.load %arg9[%c0_29, %c0_30] : memref<8x1xf32, #tpu.memory_space<vmem>>, vector<8x1xf32>
      %36 = tpu.reciprocal %35 {approx = true} : vector<8x1xf32> -> vector<8x1xf32>
      %c0_31 = arith.constant 0 : index
      %c0_32 = arith.constant 0 : index
      %37 = vector.load %arg10[%c0_31, %c0_32] : memref<8x8xf32, #tpu.memory_space<vmem>>, vector<8x8xf32>
      %38 = vector.broadcast %36 : vector<8x1xf32> to vector<8x8xf32>
      %39 = arith.mulf %37, %38 : vector<8x8xf32>
      %c0_33 = arith.constant 0 : index
      %c0_34 = arith.constant 0 : index
      %c0_35 = arith.constant 0 : index
      %c0_36 = arith.constant 0 : index
      %40 = vector.load %arg7[%c0_33, %c0_34, %c0_35, %c0_36] : memref<1x1x8x8xf32, #tpu.memory_space<vmem>>, vector<1x1x8x8xf32>
      %41 = vector.shape_cast %40 : vector<1x1x8x8xf32> to vector<8x8xf32>
      %42 = vector.shape_cast %39 : vector<8x8xf32> to vector<1x1x8x8xf32>
      tpu.vector_store %arg7[%c0_33, %c0_34, %c0_35, %c0_36], %42 {strides = array<i32>} : memref<1x1x8x8xf32, #tpu.memory_space<vmem>>, vector<1x1x8x8xf32>,
    } else {
    }
    return
  }
  func.func @transform_0(%arg0: i32, %arg1: i32, %arg2: i32, %arg3: i32) -> (i32, i32, i32, i32) {
    %c0_i32 = arith.constant 0 : i32
    %c0_i32_0 = arith.constant 0 : i32
    return %arg0, %arg1, %arg2, %c0_i32 : i32, i32, i32, i32
  }
  func.func @transform_1(%arg0: i32, %arg1: i32, %arg2: i32, %arg3: i32) -> (i32, i32, i32, i32) {
    %c0_i32 = arith.constant 0 : i32
    %c0_i32_0 = arith.constant 0 : i32
    return %arg0, %arg1, %arg3, %c0_i32 : i32, i32, i32, i32
  }
  func.func @transform_2(%arg0: i32, %arg1: i32, %arg2: i32, %arg3: i32) -> (i32, i32, i32, i32) {
    %c0_i32 = arith.constant 0 : i32
    %c0_i32_0 = arith.constant 0 : i32
    return %arg0, %arg1, %arg3, %c0_i32 : i32, i32, i32, i32
  }
  func.func @transform_3(%arg0: i32, %arg1: i32, %arg2: i32, %arg3: i32) -> (i32, i32, i32, i32) {
    %c0_i32 = arith.constant 0 : i32
    %c0_i32_0 = arith.constant 0 : i32
    return %arg0, %arg1, %arg2, %c0_i32 : i32, i32, i32, i32
  }
}

module attributes {stable_mosaic.version = 11 : i64} {
  func.func @_qkv_proj_kernel(%arg0: i32, %arg1: i32, %arg2: memref<1x8x32xf32, #tpu.memory_space<vmem>>, %arg3: memref<4x32x8xf32, #tpu.memory_space<vmem>>, %arg4: memref<4x32x8xf32, #tpu.memory_space<vmem>>, %arg5: memref<4x32x8xf32, #tpu.memory_space<vmem>>, %arg6: memref<4x1x8xf32, #tpu.memory_space<vmem>>, %arg7: memref<4x1x8xf32, #tpu.memory_space<vmem>>, %arg8: memref<4x1x8xf32, #tpu.memory_space<vmem>>, %arg9: memref<1x4x8x8xf32, #tpu.memory_space<vmem>>, %arg10: memref<1x4x8x8xf32, #tpu.memory_space<vmem>>, %arg11: memref<1x4x8x8xf32, #tpu.memory_space<vmem>>) attributes {dimension_semantics = [#tpu.dimension_semantics<parallel>, #tpu.dimension_semantics<parallel>], iteration_bounds = array<i64: 2, 1>, scalar_prefetch = 0 : i64, scratch_operands = 0 : i64, tpu.core_type = #tpu.core_type<tc>, window_params = [{transform_indices = @transform_0, window_bounds = array<i64: 1, 8, 32>}, {pipeline_mode = #tpu.pipeline_mode<synchronous>, transform_indices = @transform_1, window_bounds = array<i64: 4, 32, 8>}, {pipeline_mode = #tpu.pipeline_mode<synchronous>, transform_indices = @transform_2, window_bounds = array<i64: 4, 32, 8>}, {pipeline_mode = #tpu.pipeline_mode<synchronous>, transform_indices = @transform_3, window_bounds = array<i64: 4, 32, 8>}, {pipeline_mode = #tpu.pipeline_mode<synchronous>, transform_indices = @transform_4, window_bounds = array<i64: 4, 1, 8>}, {pipeline_mode = #tpu.pipeline_mode<synchronous>, transform_indices = @transform_5, window_bounds = array<i64: 4, 1, 8>}, {pipeline_mode = #tpu.pipeline_mode<synchronous>, transform_indices = @transform_6, window_bounds = array<i64: 4, 1, 8>}, {transform_indices = @transform_7, window_bounds = array<i64: 1, 4, 8, 8>}, {transform_indices = @transform_8, window_bounds = array<i64: 1, 4, 8, 8>}, {transform_indices = @transform_9, window_bounds = array<i64: 1, 4, 8, 8>}]} {
    %c0 = arith.constant 0 : index
    %c0_0 = arith.constant 0 : index
    %c0_1 = arith.constant 0 : index
    %0 = vector.load %arg2[%c0, %c0_0, %c0_1] : memref<1x8x32xf32, #tpu.memory_space<vmem>>, vector<1x8x32xf32>
    %1 = vector.shape_cast %0 : vector<1x8x32xf32> to vector<8x32xf32>
    %c0_2 = arith.constant 0 : index
    %c0_3 = arith.constant 0 : index
    %c0_4 = arith.constant 0 : index
    %2 = vector.load %arg3[%c0_2, %c0_3, %c0_4] : memref<4x32x8xf32, #tpu.memory_space<vmem>>, vector<1x32x8xf32>
    %3 = vector.shape_cast %2 : vector<1x32x8xf32> to vector<32x8xf32>
    %cst = arith.constant dense<0.000000e+00> : vector<8x8xf32>
    %4 = tpu.matmul %1, %3, %cst {dimension_numbers = #tpu.dot_dimension_numbers<[1], [0], [0], [1], [0, 0, 1, 1], [], []>} : vector<8x32xf32>, vector<32x8xf32>, vector<8x8xf32> -> vector<8x8xf32>
    %c0_5 = arith.constant 0 : index
    %c0_6 = arith.constant 0 : index
    %c0_7 = arith.constant 0 : index
    %5 = vector.load %arg6[%c0_5, %c0_6, %c0_7] : memref<4x1x8xf32, #tpu.memory_space<vmem>>, vector<1x1x8xf32>
    %6 = vector.shape_cast %5 : vector<1x1x8xf32> to vector<1x8xf32>
    %7 = vector.broadcast %6 : vector<1x8xf32> to vector<8x8xf32>
    %8 = arith.addf %4, %7 : vector<8x8xf32>
    %c0_8 = arith.constant 0 : index
    %c0_9 = arith.constant 0 : index
    %c0_10 = arith.constant 0 : index
    %c0_11 = arith.constant 0 : index
    %9 = vector.load %arg9[%c0_8, %c0_9, %c0_10, %c0_11] : memref<1x4x8x8xf32, #tpu.memory_space<vmem>>, vector<1x1x8x8xf32>
    %10 = vector.shape_cast %9 : vector<1x1x8x8xf32> to vector<8x8xf32>
    %11 = vector.shape_cast %8 : vector<8x8xf32> to vector<1x1x8x8xf32>
    tpu.vector_store %arg9[%c0_8, %c0_9, %c0_10, %c0_11], %11 {strides = array<i32>} : memref<1x4x8x8xf32, #tpu.memory_space<vmem>>, vector<1x1x8x8xf32>,
    %c0_12 = arith.constant 0 : index
    %c0_13 = arith.constant 0 : index
    %c0_14 = arith.constant 0 : index
    %12 = vector.load %arg4[%c0_12, %c0_13, %c0_14] : memref<4x32x8xf32, #tpu.memory_space<vmem>>, vector<1x32x8xf32>
    %13 = vector.shape_cast %12 : vector<1x32x8xf32> to vector<32x8xf32>
    %cst_15 = arith.constant dense<0.000000e+00> : vector<8x8xf32>
    %14 = tpu.matmul %1, %13, %cst_15 {dimension_numbers = #tpu.dot_dimension_numbers<[1], [0], [0], [1], [0, 0, 1, 1], [], []>} : vector<8x32xf32>, vector<32x8xf32>, vector<8x8xf32> -> vector<8x8xf32>
    %c0_16 = arith.constant 0 : index
    %c0_17 = arith.constant 0 : index
    %c0_18 = arith.constant 0 : index
    %15 = vector.load %arg7[%c0_16, %c0_17, %c0_18] : memref<4x1x8xf32, #tpu.memory_space<vmem>>, vector<1x1x8xf32>
    %16 = vector.shape_cast %15 : vector<1x1x8xf32> to vector<1x8xf32>
    %17 = vector.broadcast %16 : vector<1x8xf32> to vector<8x8xf32>
    %18 = arith.addf %14, %17 : vector<8x8xf32>
    %c0_19 = arith.constant 0 : index
    %c0_20 = arith.constant 0 : index
    %c0_21 = arith.constant 0 : index
    %c0_22 = arith.constant 0 : index
    %19 = vector.load %arg10[%c0_19, %c0_20, %c0_21, %c0_22] : memref<1x4x8x8xf32, #tpu.memory_space<vmem>>, vector<1x1x8x8xf32>
    %20 = vector.shape_cast %19 : vector<1x1x8x8xf32> to vector<8x8xf32>
    %21 = vector.shape_cast %18 : vector<8x8xf32> to vector<1x1x8x8xf32>
    tpu.vector_store %arg10[%c0_19, %c0_20, %c0_21, %c0_22], %21 {strides = array<i32>} : memref<1x4x8x8xf32, #tpu.memory_space<vmem>>, vector<1x1x8x8xf32>,
    %c0_23 = arith.constant 0 : index
    %c0_24 = arith.constant 0 : index
    %c0_25 = arith.constant 0 : index
    %22 = vector.load %arg5[%c0_23, %c0_24, %c0_25] : memref<4x32x8xf32, #tpu.memory_space<vmem>>, vector<1x32x8xf32>
    %23 = vector.shape_cast %22 : vector<1x32x8xf32> to vector<32x8xf32>
    %cst_26 = arith.constant dense<0.000000e+00> : vector<8x8xf32>
    %24 = tpu.matmul %1, %23, %cst_26 {dimension_numbers = #tpu.dot_dimension_numbers<[1], [0], [0], [1], [0, 0, 1, 1], [], []>} : vector<8x32xf32>, vector<32x8xf32>, vector<8x8xf32> -> vector<8x8xf32>
    %c0_27 = arith.constant 0 : index
    %c0_28 = arith.constant 0 : index
    %c0_29 = arith.constant 0 : index
    %25 = vector.load %arg8[%c0_27, %c0_28, %c0_29] : memref<4x1x8xf32, #tpu.memory_space<vmem>>, vector<1x1x8xf32>
    %26 = vector.shape_cast %25 : vector<1x1x8xf32> to vector<1x8xf32>
    %27 = vector.broadcast %26 : vector<1x8xf32> to vector<8x8xf32>
    %28 = arith.addf %24, %27 : vector<8x8xf32>
    %c0_30 = arith.constant 0 : index
    %c0_31 = arith.constant 0 : index
    %c0_32 = arith.constant 0 : index
    %c0_33 = arith.constant 0 : index
    %29 = vector.load %arg11[%c0_30, %c0_31, %c0_32, %c0_33] : memref<1x4x8x8xf32, #tpu.memory_space<vmem>>, vector<1x1x8x8xf32>
    %30 = vector.shape_cast %29 : vector<1x1x8x8xf32> to vector<8x8xf32>
    %31 = vector.shape_cast %28 : vector<8x8xf32> to vector<1x1x8x8xf32>
    tpu.vector_store %arg11[%c0_30, %c0_31, %c0_32, %c0_33], %31 {strides = array<i32>} : memref<1x4x8x8xf32, #tpu.memory_space<vmem>>, vector<1x1x8x8xf32>,
    %c1 = arith.constant 1 : index
    %c0_34 = arith.constant 0 : index
    %c0_35 = arith.constant 0 : index
    %32 = vector.load %arg3[%c1, %c0_34, %c0_35] : memref<4x32x8xf32, #tpu.memory_space<vmem>>, vector<1x32x8xf32>
    %33 = vector.shape_cast %32 : vector<1x32x8xf32> to vector<32x8xf32>
    %cst_36 = arith.constant dense<0.000000e+00> : vector<8x8xf32>
    %34 = tpu.matmul %1, %33, %cst_36 {dimension_numbers = #tpu.dot_dimension_numbers<[1], [0], [0], [1], [0, 0, 1, 1], [], []>} : vector<8x32xf32>, vector<32x8xf32>, vector<8x8xf32> -> vector<8x8xf32>
    %c1_37 = arith.constant 1 : index
    %c0_38 = arith.constant 0 : index
    %c0_39 = arith.constant 0 : index
    %35 = vector.load %arg6[%c1_37, %c0_38, %c0_39] : memref<4x1x8xf32, #tpu.memory_space<vmem>>, vector<1x1x8xf32>
    %36 = vector.shape_cast %35 : vector<1x1x8xf32> to vector<1x8xf32>
    %37 = vector.broadcast %36 : vector<1x8xf32> to vector<8x8xf32>
    %38 = arith.addf %34, %37 : vector<8x8xf32>
    %c0_40 = arith.constant 0 : index
    %c1_41 = arith.constant 1 : index
    %c0_42 = arith.constant 0 : index
    %c0_43 = arith.constant 0 : index
    %39 = vector.load %arg9[%c0_40, %c1_41, %c0_42, %c0_43] : memref<1x4x8x8xf32, #tpu.memory_space<vmem>>, vector<1x1x8x8xf32>
    %40 = vector.shape_cast %39 : vector<1x1x8x8xf32> to vector<8x8xf32>
    %41 = vector.shape_cast %38 : vector<8x8xf32> to vector<1x1x8x8xf32>
    tpu.vector_store %arg9[%c0_40, %c1_41, %c0_42, %c0_43], %41 {strides = array<i32>} : memref<1x4x8x8xf32, #tpu.memory_space<vmem>>, vector<1x1x8x8xf32>,
    %c1_44 = arith.constant 1 : index
    %c0_45 = arith.constant 0 : index
    %c0_46 = arith.constant 0 : index
    %42 = vector.load %arg4[%c1_44, %c0_45, %c0_46] : memref<4x32x8xf32, #tpu.memory_space<vmem>>, vector<1x32x8xf32>
    %43 = vector.shape_cast %42 : vector<1x32x8xf32> to vector<32x8xf32>
    %cst_47 = arith.constant dense<0.000000e+00> : vector<8x8xf32>
    %44 = tpu.matmul %1, %43, %cst_47 {dimension_numbers = #tpu.dot_dimension_numbers<[1], [0], [0], [1], [0, 0, 1, 1], [], []>} : vector<8x32xf32>, vector<32x8xf32>, vector<8x8xf32> -> vector<8x8xf32>
    %c1_48 = arith.constant 1 : index
    %c0_49 = arith.constant 0 : index
    %c0_50 = arith.constant 0 : index
    %45 = vector.load %arg7[%c1_48, %c0_49, %c0_50] : memref<4x1x8xf32, #tpu.memory_space<vmem>>, vector<1x1x8xf32>
    %46 = vector.shape_cast %45 : vector<1x1x8xf32> to vector<1x8xf32>
    %47 = vector.broadcast %46 : vector<1x8xf32> to vector<8x8xf32>
    %48 = arith.addf %44, %47 : vector<8x8xf32>
    %c0_51 = arith.constant 0 : index
    %c1_52 = arith.constant 1 : index
    %c0_53 = arith.constant 0 : index
    %c0_54 = arith.constant 0 : index
    %49 = vector.load %arg10[%c0_51, %c1_52, %c0_53, %c0_54] : memref<1x4x8x8xf32, #tpu.memory_space<vmem>>, vector<1x1x8x8xf32>
    %50 = vector.shape_cast %49 : vector<1x1x8x8xf32> to vector<8x8xf32>
    %51 = vector.shape_cast %48 : vector<8x8xf32> to vector<1x1x8x8xf32>
    tpu.vector_store %arg10[%c0_51, %c1_52, %c0_53, %c0_54], %51 {strides = array<i32>} : memref<1x4x8x8xf32, #tpu.memory_space<vmem>>, vector<1x1x8x8xf32>,
    %c1_55 = arith.constant 1 : index
    %c0_56 = arith.constant 0 : index
    %c0_57 = arith.constant 0 : index
    %52 = vector.load %arg5[%c1_55, %c0_56, %c0_57] : memref<4x32x8xf32, #tpu.memory_space<vmem>>, vector<1x32x8xf32>
    %53 = vector.shape_cast %52 : vector<1x32x8xf32> to vector<32x8xf32>
    %cst_58 = arith.constant dense<0.000000e+00> : vector<8x8xf32>
    %54 = tpu.matmul %1, %53, %cst_58 {dimension_numbers = #tpu.dot_dimension_numbers<[1], [0], [0], [1], [0, 0, 1, 1], [], []>} : vector<8x32xf32>, vector<32x8xf32>, vector<8x8xf32> -> vector<8x8xf32>
    %c1_59 = arith.constant 1 : index
    %c0_60 = arith.constant 0 : index
    %c0_61 = arith.constant 0 : index
    %55 = vector.load %arg8[%c1_59, %c0_60, %c0_61] : memref<4x1x8xf32, #tpu.memory_space<vmem>>, vector<1x1x8xf32>
    %56 = vector.shape_cast %55 : vector<1x1x8xf32> to vector<1x8xf32>
    %57 = vector.broadcast %56 : vector<1x8xf32> to vector<8x8xf32>
    %58 = arith.addf %54, %57 : vector<8x8xf32>
    %c0_62 = arith.constant 0 : index
    %c1_63 = arith.constant 1 : index
    %c0_64 = arith.constant 0 : index
    %c0_65 = arith.constant 0 : index
    %59 = vector.load %arg11[%c0_62, %c1_63, %c0_64, %c0_65] : memref<1x4x8x8xf32, #tpu.memory_space<vmem>>, vector<1x1x8x8xf32>
    %60 = vector.shape_cast %59 : vector<1x1x8x8xf32> to vector<8x8xf32>
    %61 = vector.shape_cast %58 : vector<8x8xf32> to vector<1x1x8x8xf32>
    tpu.vector_store %arg11[%c0_62, %c1_63, %c0_64, %c0_65], %61 {strides = array<i32>} : memref<1x4x8x8xf32, #tpu.memory_space<vmem>>, vector<1x1x8x8xf32>,
    %c2 = arith.constant 2 : index
    %c0_66 = arith.constant 0 : index
    %c0_67 = arith.constant 0 : index
    %62 = vector.load %arg3[%c2, %c0_66, %c0_67] : memref<4x32x8xf32, #tpu.memory_space<vmem>>, vector<1x32x8xf32>
    %63 = vector.shape_cast %62 : vector<1x32x8xf32> to vector<32x8xf32>
    %cst_68 = arith.constant dense<0.000000e+00> : vector<8x8xf32>
    %64 = tpu.matmul %1, %63, %cst_68 {dimension_numbers = #tpu.dot_dimension_numbers<[1], [0], [0], [1], [0, 0, 1, 1], [], []>} : vector<8x32xf32>, vector<32x8xf32>, vector<8x8xf32> -> vector<8x8xf32>
    %c2_69 = arith.constant 2 : index
    %c0_70 = arith.constant 0 : index
    %c0_71 = arith.constant 0 : index
    %65 = vector.load %arg6[%c2_69, %c0_70, %c0_71] : memref<4x1x8xf32, #tpu.memory_space<vmem>>, vector<1x1x8xf32>
    %66 = vector.shape_cast %65 : vector<1x1x8xf32> to vector<1x8xf32>
    %67 = vector.broadcast %66 : vector<1x8xf32> to vector<8x8xf32>
    %68 = arith.addf %64, %67 : vector<8x8xf32>
    %c0_72 = arith.constant 0 : index
    %c2_73 = arith.constant 2 : index
    %c0_74 = arith.constant 0 : index
    %c0_75 = arith.constant 0 : index
    %69 = vector.load %arg9[%c0_72, %c2_73, %c0_74, %c0_75] : memref<1x4x8x8xf32, #tpu.memory_space<vmem>>, vector<1x1x8x8xf32>
    %70 = vector.shape_cast %69 : vector<1x1x8x8xf32> to vector<8x8xf32>
    %71 = vector.shape_cast %68 : vector<8x8xf32> to vector<1x1x8x8xf32>
    tpu.vector_store %arg9[%c0_72, %c2_73, %c0_74, %c0_75], %71 {strides = array<i32>} : memref<1x4x8x8xf32, #tpu.memory_space<vmem>>, vector<1x1x8x8xf32>,
    %c2_76 = arith.constant 2 : index
    %c0_77 = arith.constant 0 : index
    %c0_78 = arith.constant 0 : index
    %72 = vector.load %arg4[%c2_76, %c0_77, %c0_78] : memref<4x32x8xf32, #tpu.memory_space<vmem>>, vector<1x32x8xf32>
    %73 = vector.shape_cast %72 : vector<1x32x8xf32> to vector<32x8xf32>
    %cst_79 = arith.constant dense<0.000000e+00> : vector<8x8xf32>
    %74 = tpu.matmul %1, %73, %cst_79 {dimension_numbers = #tpu.dot_dimension_numbers<[1], [0], [0], [1], [0, 0, 1, 1], [], []>} : vector<8x32xf32>, vector<32x8xf32>, vector<8x8xf32> -> vector<8x8xf32>
    %c2_80 = arith.constant 2 : index
    %c0_81 = arith.constant 0 : index
    %c0_82 = arith.constant 0 : index
    %75 = vector.load %arg7[%c2_80, %c0_81, %c0_82] : memref<4x1x8xf32, #tpu.memory_space<vmem>>, vector<1x1x8xf32>
    %76 = vector.shape_cast %75 : vector<1x1x8xf32> to vector<1x8xf32>
    %77 = vector.broadcast %76 : vector<1x8xf32> to vector<8x8xf32>
    %78 = arith.addf %74, %77 : vector<8x8xf32>
    %c0_83 = arith.constant 0 : index
    %c2_84 = arith.constant 2 : index
    %c0_85 = arith.constant 0 : index
    %c0_86 = arith.constant 0 : index
    %79 = vector.load %arg10[%c0_83, %c2_84, %c0_85, %c0_86] : memref<1x4x8x8xf32, #tpu.memory_space<vmem>>, vector<1x1x8x8xf32>
    %80 = vector.shape_cast %79 : vector<1x1x8x8xf32> to vector<8x8xf32>
    %81 = vector.shape_cast %78 : vector<8x8xf32> to vector<1x1x8x8xf32>
    tpu.vector_store %arg10[%c0_83, %c2_84, %c0_85, %c0_86], %81 {strides = array<i32>} : memref<1x4x8x8xf32, #tpu.memory_space<vmem>>, vector<1x1x8x8xf32>,
    %c2_87 = arith.constant 2 : index
    %c0_88 = arith.constant 0 : index
    %c0_89 = arith.constant 0 : index
    %82 = vector.load %arg5[%c2_87, %c0_88, %c0_89] : memref<4x32x8xf32, #tpu.memory_space<vmem>>, vector<1x32x8xf32>
    %83 = vector.shape_cast %82 : vector<1x32x8xf32> to vector<32x8xf32>
    %cst_90 = arith.constant dense<0.000000e+00> : vector<8x8xf32>
    %84 = tpu.matmul %1, %83, %cst_90 {dimension_numbers = #tpu.dot_dimension_numbers<[1], [0], [0], [1], [0, 0, 1, 1], [], []>} : vector<8x32xf32>, vector<32x8xf32>, vector<8x8xf32> -> vector<8x8xf32>
    %c2_91 = arith.constant 2 : index
    %c0_92 = arith.constant 0 : index
    %c0_93 = arith.constant 0 : index
    %85 = vector.load %arg8[%c2_91, %c0_92, %c0_93] : memref<4x1x8xf32, #tpu.memory_space<vmem>>, vector<1x1x8xf32>
    %86 = vector.shape_cast %85 : vector<1x1x8xf32> to vector<1x8xf32>
    %87 = vector.broadcast %86 : vector<1x8xf32> to vector<8x8xf32>
    %88 = arith.addf %84, %87 : vector<8x8xf32>
    %c0_94 = arith.constant 0 : index
    %c2_95 = arith.constant 2 : index
    %c0_96 = arith.constant 0 : index
    %c0_97 = arith.constant 0 : index
    %89 = vector.load %arg11[%c0_94, %c2_95, %c0_96, %c0_97] : memref<1x4x8x8xf32, #tpu.memory_space<vmem>>, vector<1x1x8x8xf32>
    %90 = vector.shape_cast %89 : vector<1x1x8x8xf32> to vector<8x8xf32>
    %91 = vector.shape_cast %88 : vector<8x8xf32> to vector<1x1x8x8xf32>
    tpu.vector_store %arg11[%c0_94, %c2_95, %c0_96, %c0_97], %91 {strides = array<i32>} : memref<1x4x8x8xf32, #tpu.memory_space<vmem>>, vector<1x1x8x8xf32>,
    %c3 = arith.constant 3 : index
    %c0_98 = arith.constant 0 : index
    %c0_99 = arith.constant 0 : index
    %92 = vector.load %arg3[%c3, %c0_98, %c0_99] : memref<4x32x8xf32, #tpu.memory_space<vmem>>, vector<1x32x8xf32>
    %93 = vector.shape_cast %92 : vector<1x32x8xf32> to vector<32x8xf32>
    %cst_100 = arith.constant dense<0.000000e+00> : vector<8x8xf32>
    %94 = tpu.matmul %1, %93, %cst_100 {dimension_numbers = #tpu.dot_dimension_numbers<[1], [0], [0], [1], [0, 0, 1, 1], [], []>} : vector<8x32xf32>, vector<32x8xf32>, vector<8x8xf32> -> vector<8x8xf32>
    %c3_101 = arith.constant 3 : index
    %c0_102 = arith.constant 0 : index
    %c0_103 = arith.constant 0 : index
    %95 = vector.load %arg6[%c3_101, %c0_102, %c0_103] : memref<4x1x8xf32, #tpu.memory_space<vmem>>, vector<1x1x8xf32>
    %96 = vector.shape_cast %95 : vector<1x1x8xf32> to vector<1x8xf32>
    %97 = vector.broadcast %96 : vector<1x8xf32> to vector<8x8xf32>
    %98 = arith.addf %94, %97 : vector<8x8xf32>
    %c0_104 = arith.constant 0 : index
    %c3_105 = arith.constant 3 : index
    %c0_106 = arith.constant 0 : index
    %c0_107 = arith.constant 0 : index
    %99 = vector.load %arg9[%c0_104, %c3_105, %c0_106, %c0_107] : memref<1x4x8x8xf32, #tpu.memory_space<vmem>>, vector<1x1x8x8xf32>
    %100 = vector.shape_cast %99 : vector<1x1x8x8xf32> to vector<8x8xf32>
    %101 = vector.shape_cast %98 : vector<8x8xf32> to vector<1x1x8x8xf32>
    tpu.vector_store %arg9[%c0_104, %c3_105, %c0_106, %c0_107], %101 {strides = array<i32>} : memref<1x4x8x8xf32, #tpu.memory_space<vmem>>, vector<1x1x8x8xf32>,
    %c3_108 = arith.constant 3 : index
    %c0_109 = arith.constant 0 : index
    %c0_110 = arith.constant 0 : index
    %102 = vector.load %arg4[%c3_108, %c0_109, %c0_110] : memref<4x32x8xf32, #tpu.memory_space<vmem>>, vector<1x32x8xf32>
    %103 = vector.shape_cast %102 : vector<1x32x8xf32> to vector<32x8xf32>
    %cst_111 = arith.constant dense<0.000000e+00> : vector<8x8xf32>
    %104 = tpu.matmul %1, %103, %cst_111 {dimension_numbers = #tpu.dot_dimension_numbers<[1], [0], [0], [1], [0, 0, 1, 1], [], []>} : vector<8x32xf32>, vector<32x8xf32>, vector<8x8xf32> -> vector<8x8xf32>
    %c3_112 = arith.constant 3 : index
    %c0_113 = arith.constant 0 : index
    %c0_114 = arith.constant 0 : index
    %105 = vector.load %arg7[%c3_112, %c0_113, %c0_114] : memref<4x1x8xf32, #tpu.memory_space<vmem>>, vector<1x1x8xf32>
    %106 = vector.shape_cast %105 : vector<1x1x8xf32> to vector<1x8xf32>
    %107 = vector.broadcast %106 : vector<1x8xf32> to vector<8x8xf32>
    %108 = arith.addf %104, %107 : vector<8x8xf32>
    %c0_115 = arith.constant 0 : index
    %c3_116 = arith.constant 3 : index
    %c0_117 = arith.constant 0 : index
    %c0_118 = arith.constant 0 : index
    %109 = vector.load %arg10[%c0_115, %c3_116, %c0_117, %c0_118] : memref<1x4x8x8xf32, #tpu.memory_space<vmem>>, vector<1x1x8x8xf32>
    %110 = vector.shape_cast %109 : vector<1x1x8x8xf32> to vector<8x8xf32>
    %111 = vector.shape_cast %108 : vector<8x8xf32> to vector<1x1x8x8xf32>
    tpu.vector_store %arg10[%c0_115, %c3_116, %c0_117, %c0_118], %111 {strides = array<i32>} : memref<1x4x8x8xf32, #tpu.memory_space<vmem>>, vector<1x1x8x8xf32>,
    %c3_119 = arith.constant 3 : index
    %c0_120 = arith.constant 0 : index
    %c0_121 = arith.constant 0 : index
    %112 = vector.load %arg5[%c3_119, %c0_120, %c0_121] : memref<4x32x8xf32, #tpu.memory_space<vmem>>, vector<1x32x8xf32>
    %113 = vector.shape_cast %112 : vector<1x32x8xf32> to vector<32x8xf32>
    %cst_122 = arith.constant dense<0.000000e+00> : vector<8x8xf32>
    %114 = tpu.matmul %1, %113, %cst_122 {dimension_numbers = #tpu.dot_dimension_numbers<[1], [0], [0], [1], [0, 0, 1, 1], [], []>} : vector<8x32xf32>, vector<32x8xf32>, vector<8x8xf32> -> vector<8x8xf32>
    %c3_123 = arith.constant 3 : index
    %c0_124 = arith.constant 0 : index
    %c0_125 = arith.constant 0 : index
    %115 = vector.load %arg8[%c3_123, %c0_124, %c0_125] : memref<4x1x8xf32, #tpu.memory_space<vmem>>, vector<1x1x8xf32>
    %116 = vector.shape_cast %115 : vector<1x1x8xf32> to vector<1x8xf32>
    %117 = vector.broadcast %116 : vector<1x8xf32> to vector<8x8xf32>
    %118 = arith.addf %114, %117 : vector<8x8xf32>
    %c0_126 = arith.constant 0 : index
    %c3_127 = arith.constant 3 : index
    %c0_128 = arith.constant 0 : index
    %c0_129 = arith.constant 0 : index
    %119 = vector.load %arg11[%c0_126, %c3_127, %c0_128, %c0_129] : memref<1x4x8x8xf32, #tpu.memory_space<vmem>>, vector<1x1x8x8xf32>
    %120 = vector.shape_cast %119 : vector<1x1x8x8xf32> to vector<8x8xf32>
    %121 = vector.shape_cast %118 : vector<8x8xf32> to vector<1x1x8x8xf32>
    tpu.vector_store %arg11[%c0_126, %c3_127, %c0_128, %c0_129], %121 {strides = array<i32>} : memref<1x4x8x8xf32, #tpu.memory_space<vmem>>, vector<1x1x8x8xf32>,
    return
  }
  func.func @transform_0(%arg0: i32, %arg1: i32) -> (i32, i32, i32) {
    %c0_i32 = arith.constant 0 : i32
    %c0_i32_0 = arith.constant 0 : i32
    return %arg0, %arg1, %c0_i32 : i32, i32, i32
  }
  func.func @transform_1(%arg0: i32, %arg1: i32) -> (i32, i32, i32) {
    %c0_i32 = arith.constant 0 : i32
    %c0_i32_0 = arith.constant 0 : i32
    %c0_i32_1 = arith.constant 0 : i32
    %c0_i32_2 = arith.constant 0 : i32
    return %c0_i32, %c0_i32_0, %c0_i32_1 : i32, i32, i32
  }
  func.func @transform_2(%arg0: i32, %arg1: i32) -> (i32, i32, i32) {
    %c0_i32 = arith.constant 0 : i32
    %c0_i32_0 = arith.constant 0 : i32
    %c0_i32_1 = arith.constant 0 : i32
    %c0_i32_2 = arith.constant 0 : i32
    return %c0_i32, %c0_i32_0, %c0_i32_1 : i32, i32, i32
  }
  func.func @transform_3(%arg0: i32, %arg1: i32) -> (i32, i32, i32) {
    %c0_i32 = arith.constant 0 : i32
    %c0_i32_0 = arith.constant 0 : i32
    %c0_i32_1 = arith.constant 0 : i32
    %c0_i32_2 = arith.constant 0 : i32
    return %c0_i32, %c0_i32_0, %c0_i32_1 : i32, i32, i32
  }
  func.func @transform_4(%arg0: i32, %arg1: i32) -> (i32, i32, i32) {
    %c0_i32 = arith.constant 0 : i32
    %c0_i32_0 = arith.constant 0 : i32
    %c0_i32_1 = arith.constant 0 : i32
    %c0_i32_2 = arith.constant 0 : i32
    return %c0_i32, %c0_i32_0, %c0_i32_1 : i32, i32, i32
  }
  func.func @transform_5(%arg0: i32, %arg1: i32) -> (i32, i32, i32) {
    %c0_i32 = arith.constant 0 : i32
    %c0_i32_0 = arith.constant 0 : i32
    %c0_i32_1 = arith.constant 0 : i32
    %c0_i32_2 = arith.constant 0 : i32
    return %c0_i32, %c0_i32_0, %c0_i32_1 : i32, i32, i32
  }
  func.func @transform_6(%arg0: i32, %arg1: i32) -> (i32, i32, i32) {
    %c0_i32 = arith.constant 0 : i32
    %c0_i32_0 = arith.constant 0 : i32
    %c0_i32_1 = arith.constant 0 : i32
    %c0_i32_2 = arith.constant 0 : i32
    return %c0_i32, %c0_i32_0, %c0_i32_1 : i32, i32, i32
  }
  func.func @transform_7(%arg0: i32, %arg1: i32) -> (i32, i32, i32, i32) {
    %c0_i32 = arith.constant 0 : i32
    %c0_i32_0 = arith.constant 0 : i32
    %c0_i32_1 = arith.constant 0 : i32
    return %arg0, %c0_i32, %arg1, %c0_i32_0 : i32, i32, i32, i32
  }
  func.func @transform_8(%arg0: i32, %arg1: i32) -> (i32, i32, i32, i32) {
    %c0_i32 = arith.constant 0 : i32
    %c0_i32_0 = arith.constant 0 : i32
    %c0_i32_1 = arith.constant 0 : i32
    return %arg0, %c0_i32, %arg1, %c0_i32_0 : i32, i32, i32, i32
  }
  func.func @transform_9(%arg0: i32, %arg1: i32) -> (i32, i32, i32, i32) {
    %c0_i32 = arith.constant 0 : i32
    %c0_i32_0 = arith.constant 0 : i32
    %c0_i32_1 = arith.constant 0 : i32
    return %arg0, %c0_i32, %arg1, %c0_i32_0 : i32, i32, i32, i32
  }
}

module attributes {stable_mosaic.version = 11 : i64} {
  func.func @_out_proj_kernel(%arg0: i32, %arg1: i32, %arg2: memref<1x4x8x8xf32, #tpu.memory_space<vmem>>, %arg3: memref<4x8x32xf32, #tpu.memory_space<vmem>>, %arg4: memref<1x32xf32, #tpu.memory_space<vmem>>, %arg5: memref<1x8x32xf32, #tpu.memory_space<vmem>>) attributes {dimension_semantics = [#tpu.dimension_semantics<parallel>, #tpu.dimension_semantics<parallel>], iteration_bounds = array<i64: 2, 1>, scalar_prefetch = 0 : i64, scratch_operands = 0 : i64, tpu.core_type = #tpu.core_type<tc>, window_params = [{transform_indices = @transform_0, window_bounds = array<i64: 1, 4, 8, 8>}, {pipeline_mode = #tpu.pipeline_mode<synchronous>, transform_indices = @transform_1, window_bounds = array<i64: 4, 8, 32>}, {pipeline_mode = #tpu.pipeline_mode<synchronous>, transform_indices = @transform_2, window_bounds = array<i64: 1, 32>}, {transform_indices = @transform_3, window_bounds = array<i64: 1, 8, 32>}]} {
    %c0 = arith.constant 0 : index
    %c0_0 = arith.constant 0 : index
    %c0_1 = arith.constant 0 : index
    %c0_2 = arith.constant 0 : index
    %0 = vector.load %arg2[%c0, %c0_0, %c0_1, %c0_2] : memref<1x4x8x8xf32, #tpu.memory_space<vmem>>, vector<1x1x8x8xf32>
    %1 = vector.shape_cast %0 : vector<1x1x8x8xf32> to vector<8x8xf32>
    %c0_3 = arith.constant 0 : index
    %c0_4 = arith.constant 0 : index
    %c0_5 = arith.constant 0 : index
    %2 = vector.load %arg3[%c0_3, %c0_4, %c0_5] : memref<4x8x32xf32, #tpu.memory_space<vmem>>, vector<1x8x32xf32>
    %3 = vector.shape_cast %2 : vector<1x8x32xf32> to vector<8x32xf32>
    %cst = arith.constant dense<0.000000e+00> : vector<8x32xf32>
    %4 = tpu.matmul %1, %3, %cst {dimension_numbers = #tpu.dot_dimension_numbers<[1], [0], [0], [1], [0, 0, 1, 1], [], []>} : vector<8x8xf32>, vector<8x32xf32>, vector<8x32xf32> -> vector<8x32xf32>
    %c0_6 = arith.constant 0 : index
    %c1 = arith.constant 1 : index
    %c0_7 = arith.constant 0 : index
    %c0_8 = arith.constant 0 : index
    %5 = vector.load %arg2[%c0_6, %c1, %c0_7, %c0_8] : memref<1x4x8x8xf32, #tpu.memory_space<vmem>>, vector<1x1x8x8xf32>
    %6 = vector.shape_cast %5 : vector<1x1x8x8xf32> to vector<8x8xf32>
    %c1_9 = arith.constant 1 : index
    %c0_10 = arith.constant 0 : index
    %c0_11 = arith.constant 0 : index
    %7 = vector.load %arg3[%c1_9, %c0_10, %c0_11] : memref<4x8x32xf32, #tpu.memory_space<vmem>>, vector<1x8x32xf32>
    %8 = vector.shape_cast %7 : vector<1x8x32xf32> to vector<8x32xf32>
    %cst_12 = arith.constant dense<0.000000e+00> : vector<8x32xf32>
    %9 = tpu.matmul %6, %8, %cst_12 {dimension_numbers = #tpu.dot_dimension_numbers<[1], [0], [0], [1], [0, 0, 1, 1], [], []>} : vector<8x8xf32>, vector<8x32xf32>, vector<8x32xf32> -> vector<8x32xf32>
    %10 = arith.addf %4, %9 : vector<8x32xf32>
    %c0_13 = arith.constant 0 : index
    %c2 = arith.constant 2 : index
    %c0_14 = arith.constant 0 : index
    %c0_15 = arith.constant 0 : index
    %11 = vector.load %arg2[%c0_13, %c2, %c0_14, %c0_15] : memref<1x4x8x8xf32, #tpu.memory_space<vmem>>, vector<1x1x8x8xf32>
    %12 = vector.shape_cast %11 : vector<1x1x8x8xf32> to vector<8x8xf32>
    %c2_16 = arith.constant 2 : index
    %c0_17 = arith.constant 0 : index
    %c0_18 = arith.constant 0 : index
    %13 = vector.load %arg3[%c2_16, %c0_17, %c0_18] : memref<4x8x32xf32, #tpu.memory_space<vmem>>, vector<1x8x32xf32>
    %14 = vector.shape_cast %13 : vector<1x8x32xf32> to vector<8x32xf32>
    %cst_19 = arith.constant dense<0.000000e+00> : vector<8x32xf32>
    %15 = tpu.matmul %12, %14, %cst_19 {dimension_numbers = #tpu.dot_dimension_numbers<[1], [0], [0], [1], [0, 0, 1, 1], [], []>} : vector<8x8xf32>, vector<8x32xf32>, vector<8x32xf32> -> vector<8x32xf32>
    %16 = arith.addf %10, %15 : vector<8x32xf32>
    %c0_20 = arith.constant 0 : index
    %c3 = arith.constant 3 : index
    %c0_21 = arith.constant 0 : index
    %c0_22 = arith.constant 0 : index
    %17 = vector.load %arg2[%c0_20, %c3, %c0_21, %c0_22] : memref<1x4x8x8xf32, #tpu.memory_space<vmem>>, vector<1x1x8x8xf32>
    %18 = vector.shape_cast %17 : vector<1x1x8x8xf32> to vector<8x8xf32>
    %c3_23 = arith.constant 3 : index
    %c0_24 = arith.constant 0 : index
    %c0_25 = arith.constant 0 : index
    %19 = vector.load %arg3[%c3_23, %c0_24, %c0_25] : memref<4x8x32xf32, #tpu.memory_space<vmem>>, vector<1x8x32xf32>
    %20 = vector.shape_cast %19 : vector<1x8x32xf32> to vector<8x32xf32>
    %cst_26 = arith.constant dense<0.000000e+00> : vector<8x32xf32>
    %21 = tpu.matmul %18, %20, %cst_26 {dimension_numbers = #tpu.dot_dimension_numbers<[1], [0], [0], [1], [0, 0, 1, 1], [], []>} : vector<8x8xf32>, vector<8x32xf32>, vector<8x32xf32> -> vector<8x32xf32>
    %22 = arith.addf %16, %21 : vector<8x32xf32>
    %c0_27 = arith.constant 0 : index
    %c0_28 = arith.constant 0 : index
    %23 = vector.load %arg4[%c0_27, %c0_28] : memref<1x32xf32, #tpu.memory_space<vmem>>, vector<1x32xf32>
    %24 = vector.broadcast %23 : vector<1x32xf32> to vector<8x32xf32>
    %25 = arith.addf %22, %24 : vector<8x32xf32>
    %c0_29 = arith.constant 0 : index
    %c0_30 = arith.constant 0 : index
    %c0_31 = arith.constant 0 : index
    %26 = vector.load %arg5[%c0_29, %c0_30, %c0_31] : memref<1x8x32xf32, #tpu.memory_space<vmem>>, vector<1x8x32xf32>
    %27 = vector.shape_cast %26 : vector<1x8x32xf32> to vector<8x32xf32>
    %28 = vector.shape_cast %25 : vector<8x32xf32> to vector<1x8x32xf32>
    tpu.vector_store %arg5[%c0_29, %c0_30, %c0_31], %28 {strides = array<i32>} : memref<1x8x32xf32, #tpu.memory_space<vmem>>, vector<1x8x32xf32>,
    return
  }
  func.func @transform_0(%arg0: i32, %arg1: i32) -> (i32, i32, i32, i32) {
    %c0_i32 = arith.constant 0 : i32
    %c0_i32_0 = arith.constant 0 : i32
    %c0_i32_1 = arith.constant 0 : i32
    return %arg0, %c0_i32, %arg1, %c0_i32_0 : i32, i32, i32, i32
  }
  func.func @transform_1(%arg0: i32, %arg1: i32) -> (i32, i32, i32) {
    %c0_i32 = arith.constant 0 : i32
    %c0_i32_0 = arith.constant 0 : i32
    %c0_i32_1 = arith.constant 0 : i32
    %c0_i32_2 = arith.constant 0 : i32
    return %c0_i32, %c0_i32_0, %c0_i32_1 : i32, i32, i32
  }
  func.func @transform_2(%arg0: i32, %arg1: i32) -> (i32, i32) {
    %c0_i32 = arith.constant 0 : i32
    %c0_i32_0 = arith.constant 0 : i32
    %c0_i32_1 = arith.constant 0 : i32
    return %c0_i32, %c0_i32_0 : i32, i32
  }
  func.func @transform_3(%arg0: i32, %arg1: i32) -> (i32, i32, i32) {
    %c0_i32 = arith.constant 0 : i32
    %c0_i32_0 = arith.constant 0 : i32
    return %arg0, %arg1, %c0_i32 : i32, i32, i32
  }
}

</mosaic_0001>

<bundles_post_ra>
// kernel: self_attention.5
= control target key start
LH: loop header
LB: loop body
LE: loop exit
PB: predicated region body
PF: predicated region fallthrough
CT: control target
= control target key end

     0   :  { %8 = vsyncpa [#allocation3], 0  ;;  %s949_s0 = inlined_call_operand.vmem [shape: f32[2,4,8,8], index: 0, kind: input, shape index: {}]   ;;  %s950_s1 = inlined_call_operand.vmem [shape: f32[4,8,32], index: 1, kind: input, shape index: {}]   ;;  %s951_s2 = inlined_call_operand.vmem [shape: f32[1,32], index: 2, kind: input, shape index: {}]   ;;  %s952_s3 = inlined_call_operand.hbm [shape: f32[2,8,32], index: 3, kind: output, shape index: {}]  }
   0x1   :  { %10 = vsyncpa [#allocation3 + $0x1], 0  ;;  %s814_s12 = smov 0   ;;  %s816_s13 = smov 0  }
   0x2   :  { %s818_s14 = smov 0   ;;  %s820_s15 = smov 0  }
   0x3   :  { %s822_s16 = smov 0   ;;  %s824_s17 = smov 0  }
   0x4 LB: > { %s602_s18 = sadd.s32 4294967295, %s789_s17   ;;  %s603_s19 = sadd.s32 4294967294, %s789_s17   ;;  %s789_s17 = sphi %s824_s17, %s16_s17   ;;  %s785_s16 = sphi %s822_s16, %s959_s16   ;;  %s781_s15 = sphi %s820_s15, %s958_s15   ;;  %s777_s14 = sphi %s818_s14, %s957_s14   ;;  %s773_s13 = sphi %s816_s13, %s956_s13   ;;  %s769_s12 = sphi %s814_s12, %s955_s12  }
   0x5   : > { %s28_s20 = sadd.s32 1, %s785_s16  ;;  %s107_s21 = sadd.s32 1, %s777_s14 }
   0x6   : > { %p30_p0 = scmp.ge.s32.totalorder %s28_s20, 2  ;;  %p117_p1 = scmp.ne.s32.totalorder %s777_s14, %s773_s13 }
   0x7   : > { %p118_p2 = scmp.eq.s32.totalorder %s602_s18, 1  ;;  %p123_p3 = scmp.ne.s32.totalorder %s773_s13, %s769_s12 }
   0x8   : > { %s961_s20 = smov (%p30_p0, %s28_s20), 0  ;;  %p124_p5 = scmp.eq.s32.totalorder %s603_s19, 1 }
   0x9   : > { %p854_p4 = por %p118_p2, %p117_p1  ;;  %s102_s23 = ssub.s32 %s785_s16, %s961_s20 }
   0xa   : > { %p606_p6 = scmp.ge.s32.totalorder %s789_s17, 1  ;;  %p105_p7 = scmp.eq.s32.totalorder %s102_s23, 0 }
   0xb   : > { %p861_p8 = por %p124_p5, %p123_p3  ;;  %p159_p9 = scmp.lt.s32.totalorder %s789_s17, 3 }
   0xc   : > { %s867_s25 = scalar_select %p105_p7, %s777_s14, %s107_s21  }
   0xd   : > { %p160_p10 = pnand %p606_p6, %p159_p9 }
   0xe   : > { %v611_v0 = vld [vmem:[%s950_s1 + $0x8] sm:$0xff] (!%p160_p10)  ;;  %v195_v1 = vld [vmem:[%s950_s1] sm:$0xff] (!%p160_p10)  ;;  %p186_p11 = scmp.lt.s32.totalorder (!%p160_p10), %s781_s15, 1  ;;  %v791_v2 = vmov (!%p160_p10), 0.0   ;;  %vm792_vm0 = vmmov (!%p160_p10), 0   ;;  %vm200_vm1 = vcmask (!%p160_p10), 64512  }
   0xf   : > { %163 = sbr.rel (%p160_p10) target bundleno = 263 (0x107), region = 32  ;;  %634 = vmatprep.subr.mxu0 (!%p160_p10), %v791_v2  ;;  %639 = vmatprep.subr.mxu1 (!%p160_p10), %v791_v2  ;;  %v615_v3 = vld [vmem:[%s950_s1 + $0x10] sm:$0xff] (!%p160_p10)  ;;  %v618_v4 = vld [vmem:[%s950_s1 + $0x18] sm:$0xff] (!%p160_p10)  ;;  %s183_s18 = sand.u32 (!%p160_p10), 1, %s773_s13   ;;  %v620_v19 = vld [vmem:[%s951_s2] ss:$0 sm:$0xff] (!%p160_p10) }
  0x10   : > { %635 = vmatpush3.msra.mxu0 (!%p160_p10), %v611_v0  ;;  %636 = vmatprep.mubr.msk.f32.mxu0 (!%p160_p10), %vm792_vm0, %v791_v2  ;;  %s607_s19 = sshll.u32 (!%p160_p10), %s183_s18, 3  ;;  %s622_s26 = sshll.u32 (!%p160_p10), %s781_s15, 7  ;;  %vm511_vm2 = vcmask (!%p160_p10), 261120  }
  0x11   : > { %640 = vmatpush3.msra.mxu1 (!%p160_p10), %v195_v1  ;;  %641 = vmatprep.mubr.msk.f32.mxu1 (!%p160_p10), %vm792_vm0, %v791_v2  ;;  %s185_s27 = scalar_lea.vmem (!%p160_p10), [#allocation2], %s607_s19  ;;  %s514_s5 = scalar_lea.sflag (!%p160_p10), [#allocation3], %s183_s18 }
  0x12   : > { %644 = vmatprep.subr.mxu0 (!%p160_p10), %v791_v2  ;;  %649 = vmatprep.subr.mxu1 (!%p160_p10), %v791_v2  ;;  %s528_s28 = sshll.u32 (!%p160_p10), %s185_s27, 4  ;;  %s904_s28 = int_to_ptr.vmem [resolvable:$true] %s528_s28 }
  0x13   : > { %s711_s6 = scalar_lea.vmem (!%p160_p10), %s904_s28, 128 }
  0x14   : > { %p712_p12 = scmp.ne.s32.totalorder (!%p160_p10), %s904_s28, %s711_s6 }
  0x16   : > { %s187_s30 = scalar_select %p186_p11, %s781_s15, 1 }
  0x17   : > { %p713_p13 = pnand %p712_p12, %p854_p4  ;;  %s793_s15 = smov [#allocation2]  }
  0x18   : > { %s625_s4 = sshll.u32 %s187_s30, 5 }
  0x19   : > { %s193_s7 = scalar_lea.vmem %s949_s0, %s625_s4  ;;  %s902_s4 = scalar_lea.hbm %s952_s3, %s622_s26 }
  0x1a   : > { %v610_v5 = vld [vmem:[%s193_s7 + $0x8] sm:$0xff]  ;;  %v194_v6 = vld [vmem:[%s193_s7] sm:$0xff]  ;;  %v614_v7 = vld [vmem:[%s193_s7 + $0x10] sm:$0xff]  ;;  %p714_p0 = pneg %p713_p13 }
  0x1b   : > { %637 = vmatmul.mubr.msk.f32.vlgmr.msra.gmra.mrb[0].mxu0 %vm200_vm1, %v610_v5  ;;  %642 = vmatmul.mubr.msk.f32.vlgmr.msra.gmra.mrb[0].mxu1 %vm200_vm1, %v194_v6  ;;  %v617_v8 = vld [vmem:[%s193_s7 + $0x18] sm:$0xff]  ;;  %s715_s7 = sshll.u32 %s793_s15, 4  ;;  %s716_s7 = int_to_ptr.vmem [resolvable:$false] %s715_s7 }
  0x1c   : > { %645 = vmatpush3.msra.mxu0 %v615_v3  ;;  %650 = vmatpush3.msra.mxu1 %v618_v4  ;;  %s717_s8 = scalar_lea.vmem %s716_s7, 256  ;;  %p718_p1 = scmp.lt.s32.totalorder %s904_s28, %s716_s7 }
  0x1d   : > { %646 = vmatprep.mubr.msk.f32.mxu0 %vm792_vm0, %v791_v2  ;;  %651 = vmatprep.mubr.msk.f32.mxu1 %vm792_vm0, %v791_v2  ;;  %p719_p2 = scmp.lt.s32.totalorder %s717_s8, %s711_s6 }
  0x1f   : > { %647 = vmatmul.mubr.msk.f32.vlgmr.msra.gmra.mrb[2].mxu0 %vm200_vm1, %v614_v7  ;;  %652 = vmatmul.mubr.msk.f32.vlgmr.msra.gmra.mrb[2].mxu1 %vm200_vm1, %v617_v8  ;;  %p720_p3 = por %p719_p2, %p718_p1 }
  0x21   : > { %p721_p5 = pnand %p720_p3, %p714_p0 }
  0xee   : > { %v270_v9 = vpop.f32.mrb[0].mxu0  ;;  %v343_v10 = vpop.f32.mrb[0].mxu1 }
  0xef   : > { %v344_v11 = vadd.f32 %v343_v10, %v270_v9  ;;  %v638_v12 = vpop.f32.mrb[1].mxu0  ;;  %v643_v13 = vpop.f32.mrb[1].mxu1 }
  0xf2   : > { %v420_v14 = vpop.f32.mrb[2].mxu0  ;;  %v498_v15 = vpop.f32.mrb[2].mxu1 }
  0xf3   : > { %v424_v16 = vadd.f32 %v420_v14, %v344_v11  ;;  %v648_v17 = vpop.f32.mrb[3].mxu0  ;;  %v653_v18 = vpop.f32.mrb[3].mxu1 }
  0xf5   : > { %v502_v20 = vadd.f32 %v498_v15, %v424_v16 }
  0xf7   : > { %v510_v21 = vadd.f32 %v620_v19, %v502_v20 }
  0xf9   : > { %512 = vst.msk [vmem:[%s185_s27] sm:$0xff] %vm511_vm2, %v510_v21 }
  0xfa   : > { %724 = shalt.err (!%p721_p5)
}
  0xfb   : > { %s725_s9 = scalar_lea.hbm %s902_s4, 128  ;;  %s729_s18 = scalar_lea.hbm %s952_s3, 256 }
  0xfc   : > { %p726_p6 = scmp.ne.s32.totalorder %s902_s4, %s725_s9  ;;  %p730_p10 = scmp.lt.u32.totalorder %s902_s4, %s952_s3 }
  0xfd   : > { %p731_p11 = scmp.lt.u32.totalorder %s729_s18, %s725_s9  ;;  %p733_p13 = scmp.lt.u32.totalorder %s725_s9, %s902_s4 }
  0xfe   : > { %p727_p7 = pnand %p726_p6, %p854_p4 }
  0xff   : > { %p732_p12 = por %p731_p11, %p730_p10 }
 0x100   : > { %p728_p9 = pneg %p727_p7 }
 0x101   : > { %p734_p0 = por %p733_p13, %p732_p12 }
 0x103   : > { %p735_p1 = pnand %p734_p0, %p728_p9 }
 0x105   : > { %738 = shalt.err (!%p735_p1)
}
 0x106   : > { %654 = dma.vmem_to_hbm [thread:$0]  (%p854_p4), %s904_s28, 128, %s902_s4, %s514_s5  }
 0x107 PF: > { %p660_p2 = scmp.ge.s32.totalorder %s789_s17, 2  ;;  %s540_s23 = sand.u32 1, %s769_s12  }
 0x108   : > { %s541_s26 = scalar_lea.sflag [#allocation3], %s540_s23 }
 0x109   : > { %p657_p3 = pnand %p660_p2, %p861_p8 }
 0x10b   : > { %764 = dma.done.wait (!%p657_p3), %s541_s26, 128  }
 0x10c   : > { %766 = vsyncadd (!%p657_p3), %s541_s26, 4294967168  ;;  %s16_s17 = sadd.s32 1, %s789_s17   ;;  %s955_s12 = smov %s773_s13 }
 0x10d   : > { %p13_p5 = scmp.ge.s32.totalorder %s16_s17, 4   ;;  %s956_s13 = smov %s777_s14 }
 0x10e   : > { %s957_s14 = smov %s867_s25  ;;  %s958_s15 = smov %s785_s16 }
 0x10f   : > { %s959_s16 = smov %s961_s20  ;;  %15 = sbr.rel (!%p13_p5) target bundleno = 4 (0x4), region = 73 }
 0x116   :  { %546 = vsyncpa [#allocation3], 1 }
 0x117   :  { %548 = vsyncpa [#allocation3 + $0x1], 1 }

// kernel: self_attention.4
= control target key start
LH: loop header
LB: loop body
LE: loop exit
PB: predicated region body
PF: predicated region fallthrough
CT: control target
= control target key end

     0   :  { %s823_s12 = smov 0   ;;  %s825_s13 = smov 0   ;;  %s898_s0 = inlined_call_operand.vmem [shape: f32[2,4,8,8], index: 0, kind: input, shape index: {}]   ;;  %s899_s1 = inlined_call_operand.vmem [shape: f32[2,4,8,8], index: 1, kind: input, shape index: {}]   ;;  %s900_s2 = inlined_call_operand.vmem [shape: f32[2,4,8,8], index: 2, kind: input, shape index: {}]   ;;  %s901_s3 = inlined_call_operand.vmem [shape: f32[2,4,8,8], index: 3, kind: output, shape index: {}]  }
   0x1   :  { %s827_s14 = smov 0   ;;  %s829_s15 = smov 0  }
   0x2   :  { %s831_s16 = smov 0  }
   0x3 LB: > { %s35_s17 = sadd.s32 1, %s789_s14  ;;  %s39_s18 = sadd.s32 1, %s793_s15  ;;  %s797_s16 = sphi %s831_s16, %s13_s16   ;;  %s793_s15 = sphi %s829_s15, %s905_s15   ;;  %s789_s14 = sphi %s827_s14, %s904_s14   ;;  %s785_s13 = sphi %s825_s13, %s903_s13   ;;  %s781_s12 = sphi %s823_s12, %s902_s12  }
   0x4   : > { %p37_p0 = scmp.ge.s32.totalorder %s35_s17, 4  ;;  %p679_p1 = scmp.ge.s32.totalorder %s797_s16, 1 }
   0x5   : > { %p217_p2 = scmp.lt.s32.totalorder %s797_s16, 9 }
   0x6   : > { %s907_s17 = smov (%p37_p0, %s35_s17), 0  ;;  %s909_s18 = smov (!%p37_p0, %s39_s18), %s793_s15 }
   0x7   : > { %p218_p3 = pnand %p679_p1, %p217_p2  ;;  %p41_p4 = scmp.ge.s32.totalorder %s909_s18, 2 }
   0x8   : > { %p275_p5 = scmp.lt.s32.totalorder (!%p218_p3), %s785_s13, 1  ;;  %p277_p6 = scmp.lt.s32.totalorder (!%p218_p3), %s781_s12, 3  ;;  %vm326_vm0 = vcmask (!%p218_p3), 64512   ;;  %v799_v0 = vmov (!%p218_p3), 0.0   ;;  %vm800_vm1 = vmmov (!%p218_p3), 0   ;;  %vm323_vm2 = vcmask (!%p218_p3), 7168  }
   0x9   : > { %s911_s18 = smov (%p41_p4, %s909_s18), 0  ;;  %221 = sbr.rel (%p218_p3) target bundleno = 820 (0x334), region = 32 }
   0xa   : > { %697 = vmatprep.subr.mxu0 (!%p218_p3), %v799_v0  ;;  %327 = vst.msk [vmem:[#allocation4] sm:$0xff] (!%p218_p3), %vm326_vm0, %v799_v0  ;;  %699 = vmatprep.mubr.msk.f32.mxu0 (!%p218_p3), %vm800_vm1, %v799_v0  ;;  %v801_v3 = vmov (!%p218_p3), -inf   ;;  %v802_v7 = vmov (!%p218_p3), 0  }
   0xb   : > { %702 = vmatprep.subr.mxu1 (!%p218_p3), %v799_v0  ;;  %704 = vmatprep.mubr.msk.f32.mxu1 (!%p218_p3), %vm800_vm1, %v799_v0  ;;  %324 = vst.msk [vmem:[#allocation2] sm:$0xff] (!%p218_p3), %vm323_vm2, %v801_v3  ;;  %325 = vst.msk [vmem:[#allocation3] sm:$0xff] (!%p218_p3), %vm323_vm2, %v799_v0 }
   0xc   : > { %751 = vset.pattern.permute.xlu0 (!%p218_p3), %v802_v7  ;;  %752 = vset.pattern.permute.xlu1 (!%p218_p3), %v802_v7 }
  0x10   : > { %s913_s13 = smov (!%p275_p5, %s785_s13), 1  ;;  %s915_s12 = smov (!%p277_p6, %s781_s12), 3 }
  0x11   : > { %s680_s19 = sshll.u32 %s913_s13, 2  ;;  %v431_v26 = vld [vmem:[#allocation4] sm:$0xff] }
  0x12   : > { %s283_s20 = sadd.s32 %s680_s19, %s915_s12  ;;  %v407_v8 = vld [vmem:[#allocation2] sm:$0xff]  ;;  %v423_v20 = vld [vmem:[#allocation3] sm:$0xff] }
  0x13   : > { %s854_s21 = sshll.u32 %s283_s20, 3 }
  0x14   : > { %s296_s24 = scalar_lea.vmem %s899_s1, %s854_s21  ;;  %s285_s27 = scalar_lea.vmem %s898_s0, %s854_s21 }
  0x15   : > { %v329_v1 = vld [vmem:[%s296_s24] sm:$0xff]  ;;  %s307_s30 = scalar_lea.vmem %s900_s2, %s854_s21  ;;  %s318_s6 = scalar_lea.vmem %s901_s3, %s854_s21 }
  0x16   : > { %698 = vmatpush3.xpose.msk.msra.mxu0 %vm326_vm0, %v329_v1  ;;  %v328_v2 = vld [vmem:[%s285_s27] sm:$0xff] }
  0x17   : > { %v438_v12 = vld [vmem:[%s307_s30] sm:$0xff] }
  0x18   : > { %703 = vmatpush3.msra.mxu1 %v438_v12 }
  0x19   : > { %700 = vmatmul.mubr.msk.f32.vlgmr.msra.gmra.mrb[0].mxu0 %vm326_vm0, %v328_v2 }
  0xec   : > { %v403_v4 = vpop.f32.mrb[0].mxu0 }
  0xed   : > { %v701_v5 = vpop.f32.mrb[1].mxu0  ;;  %v408_v6 = vsel %vm326_vm0, %v403_v4, -inf }
  0xee   : > { %409 = vmax.xlane.f32.xlu0 %v408_v6 }
 0x17b   : > { %v410_v9 = vpop.xlane.xlu0 %409 }
 0x17c   : > { %v411_v10 = vmax.f32 %v407_v8, %v410_v9 }
 0x17e   : > { %v412_v11 = vsub.f32 %v407_v8, %v411_v10  ;;  %514 = vst.msk [vmem:[#allocation2] sm:$0xff] %vm323_vm2, %v411_v10  ;;  %417 = vperm.xlu0 %751, %v411_v10  }
 0x180   : > { %v413_v18 = vmul.f32 1.442695, %v412_v11 }
 0x1fd   : > { %v418_v13 = vpop.permute.xlu0 %417 }
 0x1fe   : > { %v420_v14 = vsub.f32 %v403_v4, %v418_v13 }
 0x200   : > { %v421_v15 = vmul.f32 1.442695, %v420_v14 }
 0x202   : > { %753 = vpow2.f32 %v421_v15 }
 0x203   : > { %755 = vpow2.f32 %v413_v18 }
 0x20c   : > { %v754_v16 = vpop.eup %753 }
 0x20d   : > { %705 = vmatmul.mubr.msk.f32.vlgmr.msra.gmra.mrb[0].mxu1 %vm326_vm0, %v754_v16  ;;  %v425_v17 = vsel %vm326_vm0, %v754_v16, 0.0  ;;  %v756_v19 = vpop.eup %755 }
 0x20e   : > { %426 = vadd.xlane.f32.xlu1 %v425_v17  ;;  %v424_v21 = vmul.f32 %v756_v19, %v423_v20 }
 0x21f   : > { %434 = vperm.xlu1 %752, %v756_v19  }
 0x29b   : > { %v427_v22 = vpop.xlane.xlu1 %426 }
 0x29c   : > { %v428_v23 = vadd.f32 %v427_v22, %v424_v21 }
 0x29e   : > { %430 = vst.msk [vmem:[#allocation3] sm:$0xff] %vm323_vm2, %v428_v23 }
 0x29f   : > { %v435_v27 = vpop.permute.xlu1 %434 }
 0x2a0   : > { %v437_v28 = vmul.f32 %v435_v27, %v431_v26 }
 0x2a5   : > { %v518_v24 = vld [vmem:[#allocation3] sm:$0xff] }
 0x2a6   : > { %757 = vrcp.f32 %v518_v24 }
 0x2b0   : > { %v758_v25 = vpop.eup %757 }
 0x2b1   : > { %523 = vperm.xlu1 %752, %v758_v25  }
 0x2e0   : > { %v508_v29 = vpop.f32.mrb[0].mxu1 }
 0x2e1   : > { %v512_v30 = vadd.f32 %v508_v29, %v437_v28  ;;  %v706_v31 = vpop.f32.mrb[1].mxu1 }
 0x2e3   : > { %513 = vst.msk [vmem:[#allocation4] sm:$0xff] %vm326_vm0, %v512_v30 }
 0x2ea   : > { %v520_v32 = vld [vmem:[#allocation4] sm:$0xff] }
 0x330   : > { %v524_v33 = vpop.permute.xlu1 %523 }
 0x331   : > { %v526_v34 = vmul.f32 %v524_v33, %v520_v32 }
 0x333   : > { %527 = vst.msk [vmem:[%s318_s6] sm:$0xff] %vm326_vm0, %v526_v34 }
 0x334 PF: > { %s13_s16 = sadd.s32 1, %s797_s16   ;;  %s902_s12 = smov %s789_s14 }
 0x335   : > { %p10_p7 = scmp.ge.s32.totalorder %s13_s16, 10   ;;  %s903_s13 = smov %s793_s15 }
 0x336   : > { %s904_s14 = smov %s907_s17  ;;  %s905_s15 = smov %s911_s18 }
 0x337   :  { %12 = sbr.rel (!%p10_p7) target bundleno = 3 (0x3), region = 76 }

// kernel: self_attention.3
= control target key start
LH: loop header
LB: loop body
LE: loop exit
PB: predicated region body
PF: predicated region fallthrough
CT: control target
= control target key end

     0   :  { %s2056_s30 = smov 0   ;;  %s2058_s10 = smov 0   ;;  %s2387_s0 = inlined_call_operand.vmem [shape: f32[2,8,32], index: 0, kind: input, shape index: {}]   ;;  %s2388_s1 = inlined_call_operand.vmem [shape: f32[4,32,8], index: 1, kind: input, shape index: {}]   ;;  %s2389_s2 = inlined_call_operand.vmem [shape: f32[4,32,8], index: 2, kind: input, shape index: {}]   ;;  %s2390_s3 = inlined_call_operand.vmem [shape: f32[4,32,8], index: 3, kind: input, shape index: {}]   ;;  %s2391_s4 = inlined_call_operand.vmem [shape: f32[4,1,8], index: 4, kind: input, shape index: {}]   ;;  %s2392_s5 = inlined_call_operand.vmem [shape: f32[4,1,8], index: 5, kind: input, shape index: {}]   ;;  %s2393_s6 = inlined_call_operand.vmem [shape: f32[4,1,8], index: 6, kind: input, shape index: {}]   ;;  %s2394_s7 = inlined_call_operand.vmem [shape: f32[2,4,8,8], index: 7, kind: output, shape index: {0}]   ;;  %s2395_s8 = inlined_call_operand.vmem [shape: f32[2,4,8,8], index: 8, kind: output, shape index: {1}]   ;;  %s2396_s9 = inlined_call_operand.vmem [shape: f32[2,4,8,8], index: 9, kind: output, shape index: {2}]  }
   0x1   :  { %s2060_s11 = smov 0  }
   0x2 LB: > { %s32_s12 = sadd.s32 1, %s1997_s10  ;;  %p1597_p0 = scmp.ge.s32.totalorder %s2001_s11, 1  ;;  %s2001_s11 = sphi %s2060_s11, %s20_s11   ;;  %s1997_s10 = sphi %s2058_s10, %s2398_s10   ;;  %s1993_s30 = sphi %s2056_s30, %s2397_s30  }
   0x3   : > { %p34_p1 = scmp.ge.s32.totalorder %s32_s12, 2  ;;  %p314_p2 = scmp.lt.s32.totalorder %s2001_s11, 3 }
   0x5   : > { %s2400_s12 = smov (%p34_p1, %s32_s12), 0  ;;  %p315_p3 = pnand %p1597_p0, %p314_p2 }
   0x6   : > { %v403_v0 = vld [vmem:[%s2388_s1] sm:$0xff] (!%p315_p3)  ;;  %v404_v1 = vld [vmem:[%s2388_s1 + $0x8] sm:$0xff] (!%p315_p3)  ;;  %v2003_v3 = vmov (!%p315_p3), 0.0|0.0   ;;  %v405_v6 = vld [vmem:[%s2388_s1 + $0x10] sm:$0xff] (!%p315_p3)  ;;  %p371_p4 = scmp.lt.s32.totalorder (!%p315_p3), %s1993_s30, 1  ;;  %vm2004_vm0 = vmmov (!%p315_p3), 0  }
   0x7   : > { %318 = sbr.rel (%p315_p3) target bundleno = 273 (0x111), region = 48  ;;  %v490_v2 = vld [vmem:[%s2389_s2] sm:$0xff] (!%p315_p3)  ;;  %1880 = vmatprep.subr.bf16.mxu0 (!%p315_p3), %v2003_v3  ;;  %1886 = vmatprep.subr.bf16.mxu1 (!%p315_p3), %v2003_v3  ;;  %v1881_v4 = vpack.c.bf16 (!%p315_p3), %v404_v1, %v403_v0  ;;  %v491_v5 = vld [vmem:[%s2389_s2 + $0x8] sm:$0xff] (!%p315_p3)  ;;  %v406_v7 = vld [vmem:[%s2388_s1 + $0x18] sm:$0xff] (!%p315_p3)  ;;  %v2005_v11 = vmov (!%p315_p3), 0.0   ;;  %vm414_vm1 = vcmask (!%p315_p3), 261120  }
   0x8   : > { %v1887_v8 = vpack.c.bf16 (!%p315_p3), %v491_v5, %v490_v2  ;;  %v492_v9 = vld [vmem:[%s2389_s2 + $0x10] sm:$0xff] (!%p315_p3)  ;;  %v493_v10 = vld [vmem:[%s2389_s2 + $0x18] sm:$0xff] (!%p315_p3)  ;;  %1756 = vmatprep.mubr.msk.f32.mxu0 (!%p315_p3), %vm2004_vm0, %v2005_v11  ;;  %1767 = vmatprep.mubr.msk.f32.mxu1 (!%p315_p3), %vm2004_vm0, %v2005_v11  ;;  %v1884_v12 = vpack.c.bf16 (!%p315_p3), %v406_v7, %v405_v6  ;;  %v572_v14 = vld [vmem:[%s2390_s3] sm:$0xff] (!%p315_p3)  ;;  %vm488_vm2 = vcmask (!%p315_p3), 64512  }
   0x9   : > { %1882 = vmatpush3.bf16.msra.mxu0 (!%p315_p3), %v1881_v4  ;;  %v1890_v13 = vpack.c.bf16 (!%p315_p3), %v493_v10, %v492_v9  ;;  %v573_v15 = vld [vmem:[%s2390_s3 + $0x8] sm:$0xff] (!%p315_p3)  ;;  %v1611_v16 = vld [vmem:[%s2388_s1 + $0x20] sm:$0xff] (!%p315_p3)  ;;  %v574_v21 = vld [vmem:[%s2390_s3 + $0x10] sm:$0xff] (!%p315_p3) }
   0xa   : > { %1888 = vmatpush3.bf16.msra.mxu1 (!%p315_p3), %v1887_v8  ;;  %1883 = vmatprep.subr.bf16.mxu0 (!%p315_p3), %v2003_v3  ;;  %v1612_v17 = vld [vmem:[%s2388_s1 + $0x28] sm:$0xff] (!%p315_p3)  ;;  %v1893_v19 = vpack.c.bf16 (!%p315_p3), %v573_v15, %v572_v14  ;;  %v575_v22 = vld [vmem:[%s2390_s3 + $0x18] sm:$0xff] (!%p315_p3)  ;;  %v1613_v23 = vld [vmem:[%s2388_s1 + $0x30] sm:$0xff] (!%p315_p3) }
   0xb   : > { %1889 = vmatprep.subr.bf16.mxu1 (!%p315_p3), %v2003_v3  ;;  %v1899_v20 = vpack.c.bf16 (!%p315_p3), %v1612_v17, %v1611_v16  ;;  %v1614_v24 = vld [vmem:[%s2388_s1 + $0x38] sm:$0xff] (!%p315_p3)  ;;  %v1896_v25 = vpack.c.bf16 (!%p315_p3), %v575_v22, %v574_v21  ;;  %v1619_v27 = vld [vmem:[%s2389_s2 + $0x20] sm:$0xff] (!%p315_p3)  ;;  %v1620_v28 = vld [vmem:[%s2389_s2 + $0x28] sm:$0xff] (!%p315_p3) }
   0xc   : > { %v1902_v26 = vpack.c.bf16 (!%p315_p3), %v1614_v24, %v1613_v23  ;;  %v1627_v29 = vld [vmem:[%s2390_s3 + $0x20] sm:$0xff] (!%p315_p3)  ;;  %v1628_v30 = vld [vmem:[%s2390_s3 + $0x28] sm:$0xff] (!%p315_p3)  ;;  %v1905_v31 = vpack.c.bf16 (!%p315_p3), %v1620_v28, %v1619_v27  ;;  %v1621_v33 = vld [vmem:[%s2389_s2 + $0x30] sm:$0xff] (!%p315_p3) }
   0xd   : > { %1885 = vmatpush3.bf16.msra.mxu0 (!%p315_p3), %v1884_v12  ;;  %v1911_v32 = vpack.c.bf16 (!%p315_p3), %v1628_v30, %v1627_v29  ;;  %v1622_v34 = vld [vmem:[%s2389_s2 + $0x38] sm:$0xff] (!%p315_p3)  ;;  %v1629_v35 = vld [vmem:[%s2390_s3 + $0x30] sm:$0xff] (!%p315_p3)  ;;  %v1635_v39 = vld [vmem:[%s2388_s1 + $0x40] sm:$0xff] (!%p315_p3) }
   0xe   : > { %s2402_s30 = smov (!%p371_p4, %s1993_s30), 1  ;;  %1891 = vmatpush3.bf16.msra.mxu1 %v1890_v13  ;;  %1892 = vmatprep.subr.bf16.mxu0 %v2003_v3  ;;  %v1630_v36 = vld [vmem:[%s2390_s3 + $0x38] sm:$0xff]  ;;  %v1908_v37 = vpack.c.bf16 %v1622_v34, %v1621_v33  ;;  %v1636_v40 = vld [vmem:[%s2388_s1 + $0x48] sm:$0xff]  ;;  %v1643_v41 = vld [vmem:[%s2389_s2 + $0x40] sm:$0xff] }
   0xf   : > { %s1598_s16 = sshll.u32 %s2402_s30, 3  ;;  %1898 = vmatprep.subr.bf16.mxu1 %v2003_v3  ;;  %v1914_v38 = vpack.c.bf16 %v1630_v36, %v1629_v35  ;;  %v1644_v42 = vld [vmem:[%s2389_s2 + $0x48] sm:$0xff]  ;;  %v1917_v43 = vpack.c.bf16 %v1636_v40, %v1635_v39  ;;  %v1637_v45 = vld [vmem:[%s2388_s1 + $0x50] sm:$0xff]  ;;  %v1638_v46 = vld [vmem:[%s2388_s1 + $0x58] sm:$0xff]  ;;  %s1685_s28 = sshll.u32 %s2402_s30, 5 }
  0x10   : > { %s377_s23 = scalar_lea.vmem %s2387_s0, %s1598_s16  ;;  %v1923_v44 = vpack.c.bf16 %v1644_v42, %v1643_v41  ;;  %v1645_v47 = vld [vmem:[%s2389_s2 + $0x50] sm:$0xff]  ;;  %v1646_v48 = vld [vmem:[%s2389_s2 + $0x58] sm:$0xff]  ;;  %v1920_v49 = vpack.c.bf16 %v1638_v46, %v1637_v45  ;;  %v1651_v51 = vld [vmem:[%s2390_s3 + $0x40] sm:$0xff]  ;;  %s2312_s18 = scalar_lea.vmem %s2394_s7, %s1685_s28 }
  0x11   : > { %v2128_v18 = vld [vmem:[%s377_s23] sm:$0xff]  ;;  %v1926_v50 = vpack.c.bf16 %v1646_v48, %v1645_v47  ;;  %v1652_v52 = vld [vmem:[%s2390_s3 + $0x48] sm:$0xff]  ;;  %v1653_v57 = vld [vmem:[%s2390_s3 + $0x50] sm:$0xff]  ;;  %s2317_s30 = scalar_lea.vmem %s2395_s8, %s1685_s28  ;;  %s2332_s27 = scalar_lea.vmem %s2396_s9, %s1685_s28 }
  0x12   : > { %1757 = vmatmul.mubr.msk.f32.vlgmr.msra.gmra.mrb[0].mxu0 %vm414_vm1, %v2128_v18  ;;  %1768 = vmatmul.mubr.msk.f32.vlgmr.msra.gmra.mrb[0].mxu1 %vm414_vm1, %v2128_v18  ;;  %v1659_v53 = vld [vmem:[%s2388_s1 + $0x60] sm:$0xff]  ;;  %v1660_v54 = vld [vmem:[%s2388_s1 + $0x68] sm:$0xff]  ;;  %v1929_v55 = vpack.c.bf16 %v1652_v52, %v1651_v51  ;;  %v1654_v58 = vld [vmem:[%s2390_s3 + $0x58] sm:$0xff] }
  0x13   : > { %1894 = vmatpush3.bf16.msra.mxu0 %v1893_v19  ;;  %1900 = vmatpush3.bf16.msra.mxu1 %v1899_v20  ;;  %v1935_v56 = vpack.c.bf16 %v1660_v54, %v1659_v53  ;;  %v1661_v59 = vld [vmem:[%s2388_s1 + $0x70] sm:$0xff]  ;;  %v1662_v60 = vld [vmem:[%s2388_s1 + $0x78] sm:$0xff]  ;;  %v1932_v61 = vpack.c.bf16 %v1654_v58, %v1653_v57  ;;  %v1667_v63 = vld [vmem:[%s2389_s2 + $0x60] sm:$0xff] }
  0x14   : > { %1895 = vmatprep.subr.bf16.mxu0 %v2003_v3  ;;  %1901 = vmatprep.subr.bf16.mxu1 %v2003_v3  ;;  %v1938_v62 = vpack.c.bf16 %v1662_v60, %v1661_v59  ;;  %v1668_v0 = vld [vmem:[%s2389_s2 + $0x68] sm:$0xff]  ;;  %v1675_v1 = vld [vmem:[%s2390_s3 + $0x60] sm:$0xff]  ;;  %v1669_v6 = vld [vmem:[%s2389_s2 + $0x70] sm:$0xff] }
  0x15   : > { %1778 = vmatprep.mubr.msk.f32.mxu0 %vm2004_vm0, %v2005_v11  ;;  %1789 = vmatprep.mubr.msk.f32.mxu1 %vm2004_vm0, %v2005_v11  ;;  %v1676_v2 = vld [vmem:[%s2390_s3 + $0x68] sm:$0xff]  ;;  %v1941_v4 = vpack.c.bf16 %v1668_v0, %v1667_v63  ;;  %v1670_v7 = vld [vmem:[%s2389_s2 + $0x78] sm:$0xff]  ;;  %v1677_v8 = vld [vmem:[%s2390_s3 + $0x70] sm:$0xff] }
  0x16   : > { %v1947_v5 = vpack.c.bf16 %v1676_v2, %v1675_v1  ;;  %v1678_v9 = vld [vmem:[%s2390_s3 + $0x78] sm:$0xff]  ;;  %v1944_v10 = vpack.c.bf16 %v1670_v7, %v1669_v6  ;;  %v1605_v13 = vld [vmem:[%s2391_s4] ss:$0 sm:$0xff]  ;;  %v1616_v20 = vld [vmem:[%s2391_s4 + $0x1] ss:$0 sm:$0xff] }
  0x17   : > { %1897 = vmatpush3.bf16.msra.mxu0 %v1896_v25  ;;  %1903 = vmatpush3.bf16.msra.mxu1 %v1902_v26  ;;  %v1950_v12 = vpack.c.bf16 %v1678_v9, %v1677_v8  ;;  %v1609_v19 = vld [vmem:[%s2393_s6] ss:$0 sm:$0xff]  ;;  %v1624_v27 = vld [vmem:[%s2392_s5 + $0x1] ss:$0 sm:$0xff]  ;;  %v1640_v35 = vld [vmem:[%s2391_s4 + $0x2] ss:$0 sm:$0xff] }
  0x18   : > { %1904 = vmatprep.subr.bf16.mxu0 %v2003_v3  ;;  %1910 = vmatprep.subr.bf16.mxu1 %v2003_v3  ;;  %v1632_v28 = vld [vmem:[%s2393_s6 + $0x1] ss:$0 sm:$0xff]  ;;  %v1648_v36 = vld [vmem:[%s2392_s5 + $0x2] ss:$0 sm:$0xff]  ;;  %v1672_v51 = vld [vmem:[%s2392_s5 + $0x3] ss:$0 sm:$0xff] }
  0x19   : > { %v1680_v52 = vld [vmem:[%s2393_s6 + $0x3] ss:$0 sm:$0xff] }
  0x1a   : > { %1779 = vmatmul.mubr.msk.f32.vlgmr.msra.gmra.mrb[2].mxu0 %vm414_vm1, %v2128_v18  ;;  %1790 = vmatmul.mubr.msk.f32.vlgmr.msra.gmra.mrb[2].mxu1 %vm414_vm1, %v2128_v18 }
  0x1b   : > { %1906 = vmatpush3.bf16.msra.mxu0 %v1905_v31  ;;  %1912 = vmatpush3.bf16.msra.mxu1 %v1911_v32 }
  0x1c   : > { %1907 = vmatprep.subr.bf16.mxu0 %v2003_v3  ;;  %1913 = vmatprep.subr.bf16.mxu1 %v2003_v3 }
  0x1d   : > { %1800 = vmatprep.mubr.msk.f32.mxu0 %vm2004_vm0, %v2005_v11  ;;  %1811 = vmatprep.mubr.msk.f32.mxu1 %vm2004_vm0, %v2005_v11 }
  0x1f   : > { %1909 = vmatpush3.bf16.msra.mxu0 %v1908_v37  ;;  %1915 = vmatpush3.bf16.msra.mxu1 %v1914_v38 }
  0x20   : > { %1916 = vmatprep.subr.bf16.mxu0 %v2003_v3  ;;  %1922 = vmatprep.subr.bf16.mxu1 %v2003_v3 }
  0x22   : > { %1801 = vmatmul.mubr.msk.f32.vlgmr.msra.gmra.mrb[4].mxu0 %vm414_vm1, %v2128_v18  ;;  %1812 = vmatmul.mubr.msk.f32.vlgmr.msra.gmra.mrb[4].mxu1 %vm414_vm1, %v2128_v18 }
  0x23   : > { %1918 = vmatpush3.bf16.msra.mxu0 %v1917_v43  ;;  %1924 = vmatpush3.bf16.msra.mxu1 %v1923_v44  ;;  %v1656_v43 = vld [vmem:[%s2393_s6 + $0x2] ss:$0 sm:$0xff]  ;;  %v1664_v44 = vld [vmem:[%s2391_s4 + $0x3] ss:$0 sm:$0xff] }
  0x24   : > { %1919 = vmatprep.subr.bf16.mxu0 %v2003_v3  ;;  %1925 = vmatprep.subr.bf16.mxu1 %v2003_v3 }
  0x25   : > { %1822 = vmatprep.mubr.msk.f32.mxu0 %vm2004_vm0, %v2005_v11  ;;  %1833 = vmatprep.mubr.msk.f32.mxu1 %vm2004_vm0, %v2005_v11 }
  0x27   : > { %1921 = vmatpush3.bf16.msra.mxu0 %v1920_v49  ;;  %1927 = vmatpush3.bf16.msra.mxu1 %v1926_v50 }
  0x28   : > { %1928 = vmatprep.subr.bf16.mxu0 %v2003_v3  ;;  %1934 = vmatprep.subr.bf16.mxu1 %v2003_v3 }
  0x2a   : > { %1823 = vmatmul.mubr.msk.f32.vlgmr.msra.gmra.mrb[6].mxu0 %vm414_vm1, %v2128_v18  ;;  %1834 = vmatmul.mubr.msk.f32.vlgmr.msra.gmra.mrb[6].mxu1 %vm414_vm1, %v2128_v18 }
  0x2b   : > { %1930 = vmatpush3.bf16.msra.mxu0 %v1929_v55  ;;  %1936 = vmatpush3.bf16.msra.mxu1 %v1935_v56 }
  0x2c   : > { %1931 = vmatprep.subr.bf16.mxu0 %v2003_v3  ;;  %1937 = vmatprep.subr.bf16.mxu1 %v2003_v3 }
  0x2d   : > { %1844 = vmatprep.mubr.msk.f32.mxu0 %vm2004_vm0, %v2005_v11  ;;  %1855 = vmatprep.mubr.msk.f32.mxu1 %vm2004_vm0, %v2005_v11 }
  0x2f   : > { %1933 = vmatpush3.bf16.msra.mxu0 %v1932_v61  ;;  %1939 = vmatpush3.bf16.msra.mxu1 %v1938_v62 }
  0x30   : > { %1940 = vmatprep.subr.bf16.mxu0 %v2003_v3  ;;  %1946 = vmatprep.subr.bf16.mxu1 %v2003_v3 }
  0x32   : > { %1845 = vmatmul.mubr.msk.f32.vlgmr.msra.gmra.mrb[8].mxu0 %vm414_vm1, %v2128_v18  ;;  %1856 = vmatmul.mubr.msk.f32.vlgmr.msra.gmra.mrb[8].mxu1 %vm414_vm1, %v2128_v18 }
  0x33   : > { %1942 = vmatpush3.bf16.msra.mxu0 %v1941_v4  ;;  %1948 = vmatpush3.bf16.msra.mxu1 %v1947_v5 }
  0x34   : > { %1943 = vmatprep.subr.bf16.mxu0 %v2003_v3  ;;  %1949 = vmatprep.subr.bf16.mxu1 %v2003_v3  ;;  %v1607_v3 = vld [vmem:[%s2392_s5] ss:$0 sm:$0xff] }
  0x35   : > { %1866 = vmatprep.mubr.msk.f32.mxu0 %vm2004_vm0, %v2005_v11  ;;  %1877 = vmatprep.mubr.msk.f32.mxu1 %vm2004_vm0, %v2005_v11 }
  0x37   : > { %1945 = vmatpush3.bf16.msra.mxu0 %v1944_v10  ;;  %1951 = vmatpush3.bf16.msra.mxu1 %v1950_v12 }
  0x3a   : > { %1867 = vmatmul.mubr.msk.f32.vlgmr.msra.gmra.mrb[10].mxu0 %vm414_vm1, %v2128_v18  ;;  %1878 = vmatmul.mubr.msk.f32.vlgmr.msra.gmra.mrb[10].mxu1 %vm414_vm1, %v2128_v18 }
  0xe5   : > { %v484_v11 = vpop.f32.mrb[0].mxu0  ;;  %v567_v15 = vpop.f32.mrb[0].mxu1 }
  0xe6   : > { %v485_v14 = vadd.f32 %v1605_v13, %v484_v11  ;;  %v1758_v16 = vpop.f32.mrb[1].mxu0  ;;  %v568_v17 = vadd.f32 %v1607_v3, %v567_v15  ;;  %v1769_v18 = vpop.f32.mrb[1].mxu1 }
  0xe8   : > { %489 = vst.msk [vmem:[%s2312_s18] sm:$0xff] %vm488_vm2, %v485_v14  ;;  %571 = vst.msk [vmem:[%s2317_s30] sm:$0xff] %vm488_vm2, %v568_v17 }
  0xed   : > { %v649_v21 = vpop.f32.mrb[2].mxu0  ;;  %v733_v23 = vpop.f32.mrb[2].mxu1 }
  0xee   : > { %v650_v22 = vadd.f32 %v1609_v19, %v649_v21  ;;  %v1780_v24 = vpop.f32.mrb[3].mxu0  ;;  %v734_v25 = vadd.f32 %v1616_v20, %v733_v23  ;;  %v1791_v26 = vpop.f32.mrb[3].mxu1 }
  0xf0   : > { %653 = vst.msk [vmem:[%s2332_s27] sm:$0xff] %vm488_vm2, %v650_v22  ;;  %1618 = vst.msk [vmem:[%s2312_s18 + $0x8] sm:$0xff] %vm488_vm2, %v734_v25 }
  0xf5   : > { %v818_v29 = vpop.f32.mrb[4].mxu0  ;;  %v903_v31 = vpop.f32.mrb[4].mxu1 }
  0xf6   : > { %v819_v30 = vadd.f32 %v1624_v27, %v818_v29  ;;  %v1802_v32 = vpop.f32.mrb[5].mxu0  ;;  %v904_v33 = vadd.f32 %v1632_v28, %v903_v31  ;;  %v1813_v34 = vpop.f32.mrb[5].mxu1 }
  0xf8   : > { %1626 = vst.msk [vmem:[%s2317_s30 + $0x8] sm:$0xff] %vm488_vm2, %v819_v30  ;;  %1634 = vst.msk [vmem:[%s2332_s27 + $0x8] sm:$0xff] %vm488_vm2, %v904_v33 }
  0xfd   : > { %v988_v37 = vpop.f32.mrb[6].mxu0  ;;  %v1073_v39 = vpop.f32.mrb[6].mxu1 }
  0xfe   : > { %v989_v38 = vadd.f32 %v1640_v35, %v988_v37  ;;  %v1824_v40 = vpop.f32.mrb[7].mxu0  ;;  %v1074_v41 = vadd.f32 %v1648_v36, %v1073_v39  ;;  %v1835_v42 = vpop.f32.mrb[7].mxu1 }
 0x100   : > { %1642 = vst.msk [vmem:[%s2312_s18 + $0x10] sm:$0xff] %vm488_vm2, %v989_v38  ;;  %1650 = vst.msk [vmem:[%s2317_s30 + $0x10] sm:$0xff] %vm488_vm2, %v1074_v41 }
 0x105   : > { %v1158_v45 = vpop.f32.mrb[8].mxu0  ;;  %v1243_v47 = vpop.f32.mrb[8].mxu1 }
 0x106   : > { %v1159_v46 = vadd.f32 %v1656_v43, %v1158_v45  ;;  %v1846_v48 = vpop.f32.mrb[9].mxu0  ;;  %v1244_v49 = vadd.f32 %v1664_v44, %v1243_v47  ;;  %v1857_v50 = vpop.f32.mrb[9].mxu1 }
 0x108   : > { %1658 = vst.msk [vmem:[%s2332_s27 + $0x10] sm:$0xff] %vm488_vm2, %v1159_v46  ;;  %1666 = vst.msk [vmem:[%s2312_s18 + $0x18] sm:$0xff] %vm488_vm2, %v1244_v49 }
 0x10d   : > { %v1328_v53 = vpop.f32.mrb[10].mxu0  ;;  %v1413_v55 = vpop.f32.mrb[10].mxu1 }
 0x10e   : > { %v1329_v54 = vadd.f32 %v1672_v51, %v1328_v53  ;;  %v1868_v56 = vpop.f32.mrb[11].mxu0  ;;  %v1414_v57 = vadd.f32 %v1680_v52, %v1413_v55  ;;  %v1879_v58 = vpop.f32.mrb[11].mxu1 }
 0x110   : > { %1674 = vst.msk [vmem:[%s2317_s30 + $0x18] sm:$0xff] %vm488_vm2, %v1329_v54  ;;  %1682 = vst.msk [vmem:[%s2332_s27 + $0x18] sm:$0xff] %vm488_vm2, %v1414_v57 }
 0x111 PF: > { %s20_s11 = sadd.s32 1, %s2001_s11   ;;  %s2397_s30 = smov %s1997_s10 }
 0x112   : > { %p17_p5 = scmp.ge.s32.totalorder %s20_s11, 4   ;;  %s2398_s10 = smov %s2400_s12 }
 0x114   :  { %19 = sbr.rel (!%p17_p5) target bundleno = 2 (0x2), region = 129 }

</bundles_post_ra>
